<compile_context>
chip_gen: v5e
topology: v5e:2x2
jax: 0.10.0
libtpu: 0.0.40
codegen_flags: <defaults>
</compile_context>

<pallas_src>
import functools

import jax
import jax.numpy as jnp
from jax.experimental import pallas as pl
from jax.experimental.pallas import tpu as pltpu

BN_EPS = 1e-5
_LANE = 128


def _round_up(x, m):
    return (x + m - 1) // m * m


def _resident(shape):
    """BlockSpec for an array kept whole & resident in VMEM across the grid."""
    return pl.BlockSpec(shape, lambda i: (0,) * len(shape))


# ---------------------------------------------------------------------------
# Fused kernel
# ---------------------------------------------------------------------------

def _fused_predictor_kernel(x_ref, w1_ref, w2_ref, w3_ref,
                            g1_ref, b1_ref, g2_ref, b2_ref,
                            p_ref,
                            h1_ref, h2_ref, sum1_ref, sq1_ref, sum2_ref, sq2_ref,
                            *, tile_b, batch, b_pad, inv_n):
    i = pl.program_id(0)
    nb = pl.num_programs(0)

    @pl.when(i == 0)
    def _init():
        sum1_ref[...] = jnp.zeros_like(sum1_ref)
        sq1_ref[...] = jnp.zeros_like(sq1_ref)

    # --- Pass 0 (pipelined over the grid): h1 = x @ W1 + whole-batch stats ---
    row0 = pl.multiple_of(i * tile_b, tile_b)
    h1 = jnp.dot(x_ref[...], w1_ref[...], preferred_element_type=jnp.float32)
    h1_ref[pl.ds(row0, tile_b), :] = h1
    sum1_ref[...] += jnp.sum(h1, axis=0, keepdims=True)
    sq1_ref[...] += jnp.sum(h1 * h1, axis=0, keepdims=True)

    # --- Epilogue on the last grid step: BN1+ReLU+L2 then BN2+ReLU+L3 -------
    @pl.when(i == nb - 1)
    def _epilogue():
        # Fold BN1 into per-feature scale/shift (rsqrt -> EUP slot).
        mean1 = sum1_ref[...] * inv_n
        var1 = jnp.maximum(sq1_ref[...] * inv_n - mean1 * mean1, 0.0)
        scale1 = g1_ref[...] * jax.lax.rsqrt(var1 + BN_EPS)
        shift1 = b1_ref[...] - mean1 * scale1

        sum2_ref[...] = jnp.zeros_like(sum2_ref)
        sq2_ref[...] = jnp.zeros_like(sq2_ref)

        @pl.loop(0, nb)
        def _pass_a(t):
            r0 = pl.multiple_of(t * tile_b, tile_b)
            a1 = jnp.maximum(h1_ref[pl.ds(r0, tile_b), :] * scale1 + shift1, 0.0)
            if batch < b_pad:  # static: only emitted when batch was padded
                rows = r0 + jax.lax.broadcasted_iota(jnp.int32, (tile_b, 1), 0)
                a1 = jnp.where(rows < batch, a1, 0.0)
            h2 = jnp.dot(a1.astype(jnp.bfloat16), w2_ref[...],
                         preferred_element_type=jnp.float32)
            h2_ref[pl.ds(r0, tile_b), :] = h2
            sum2_ref[...] += jnp.sum(h2, axis=0, keepdims=True)
            sq2_ref[...] += jnp.sum(h2 * h2, axis=0, keepdims=True)

        # Fold BN2.
        mean2 = sum2_ref[...] * inv_n
        var2 = jnp.maximum(sq2_ref[...] * inv_n - mean2 * mean2, 0.0)
        scale2 = g2_ref[...] * jax.lax.rsqrt(var2 + BN_EPS)
        shift2 = b2_ref[...] - mean2 * scale2

        @pl.loop(0, nb)
        def _pass_b(t):
            r0 = pl.multiple_of(t * tile_b, tile_b)
            a2 = jnp.maximum(h2_ref[pl.ds(r0, tile_b), :] * scale2 + shift2, 0.0)
            p_ref[pl.ds(r0, tile_b), :] = jnp.dot(
                a2.astype(jnp.bfloat16), w3_ref[...],
                preferred_element_type=jnp.float32)


# ---------------------------------------------------------------------------
# Wrapper
# ---------------------------------------------------------------------------

def _vmem_footprint_bytes(tile_b, b_pad, din_p, a_p, c_p):
    """Approximate VMEM footprint of the fused kernel (2x spec'd buffers for
    double-buffering headroom + scratch)."""
    bf16, f32 = 2, 4
    spec_bytes = (tile_b * din_p * bf16                                 # x tile
                  + (din_p * din_p + din_p * a_p + a_p * c_p) * bf16    # weights
                  + 2 * din_p * f32 + 2 * a_p * f32                     # gamma/beta
                  + b_pad * c_p * f32)                                  # output
    scratch_bytes = (b_pad * (din_p + a_p) * f32                        # h1, h2
                     + 2 * (din_p + a_p) * f32)                         # stats
    return 2 * spec_bytes + scratch_bytes


def simsiam_stage3_forward(x, params, *, batch_tile=256,
                           vmem_budget_bytes=56 * 1024 * 1024):
    """x: (B, in_dim) float32.  Returns (B, class_num) float32."""
    B, in_dim = x.shape
    a_dim = params["w2"].shape[1]
    class_num = params["w3"].shape[1]

    # Lane-pad feature dims to multiples of 128; batch tile is a multiple of 16
    # (bf16 sublane packing); batch padded to a multiple of the tile.
    din_p = _round_up(in_dim, _LANE)
    a_p = _round_up(a_dim, _LANE)
    c_p = _round_up(class_num, _LANE)
    tile_b = _round_up(max(16, min(batch_tile, _round_up(B, 16))), 16)
    b_pad = _round_up(B, tile_b)
    nb = b_pad // tile_b

    footprint = _vmem_footprint_bytes(tile_b, b_pad, din_p, a_p, c_p)
    if footprint > vmem_budget_bytes:
        # TODO(synk): add a batch-chunked multi-call fallback for batches whose
        # full-batch intermediates do not fit in VMEM (B >~ 10K at in_dim=384).
        raise ValueError(
            f"fused kernel VMEM footprint {footprint} bytes exceeds budget "
            f"{vmem_budget_bytes}; reduce batch size")
    vmem_limit = min(footprint + (8 << 20), 64 << 20)   # margin; <= v7x physical

    pad2 = lambda m, r, c: jnp.pad(m, ((0, r - m.shape[0]), (0, c - m.shape[1])))

    # Matmul operands in bf16 (MXU-native); BN params padded with zeros so
    # padded feature columns stay exactly zero through BN + ReLU.
    x_p = pad2(x, b_pad, din_p).astype(jnp.bfloat16)
    w1 = pad2(params["w1"], din_p, din_p).astype(jnp.bfloat16)
    w2 = pad2(params["w2"], din_p, a_p).astype(jnp.bfloat16)
    w3 = pad2(params["w3"], a_p, c_p).astype(jnp.bfloat16)
    g1 = pad2(params["g1"], 1, din_p)
    b1 = pad2(params["b1"], 1, din_p)
    g2 = pad2(params["g2"], 1, a_p)
    b2 = pad2(params["b2"], 1, a_p)

    kernel = functools.partial(_fused_predictor_kernel,
                               tile_b=tile_b, batch=B, b_pad=b_pad,
                               inv_n=1.0 / B)

    p = pl.pallas_call(
        kernel,
        out_shape=jax.ShapeDtypeStruct((b_pad, c_p), jnp.float32),
        grid_spec=pltpu.PrefetchScalarGridSpec(
            num_scalar_prefetch=0,
            grid=(nb,),
            in_specs=[pl.BlockSpec((tile_b, din_p), lambda i: (i, 0)),  # x streamed
                      _resident((din_p, din_p)),     # W1
                      _resident((din_p, a_p)),       # W2
                      _resident((a_p, c_p)),         # W3
                      _resident((1, din_p)),         # gamma1
                      _resident((1, din_p)),         # beta1
                      _resident((1, a_p)),           # gamma2
                      _resident((1, a_p))],          # beta2
            out_specs=pl.BlockSpec((b_pad, c_p), lambda i: (0, 0)),     # resident
            scratch_shapes=[pltpu.VMEM((b_pad, din_p), jnp.float32),    # h1
                            pltpu.VMEM((b_pad, a_p), jnp.float32),      # h2
                            pltpu.VMEM((1, din_p), jnp.float32),        # sum1
                            pltpu.VMEM((1, din_p), jnp.float32),        # sq1
                            pltpu.VMEM((1, a_p), jnp.float32),          # sum2
                            pltpu.VMEM((1, a_p), jnp.float32)]),        # sq2
        compiler_params=pltpu.CompilerParams(
            dimension_semantics=("arbitrary",),   # stats/scratch carried across tiles
            vmem_limit_bytes=vmem_limit),
    )(x_p, w1, w2, w3, g1, b1, g2, b2)

    return p[:B, :class_num]


# ---------------------------------------------------------------------------
# Parameters & pure-JAX reference
# ---------------------------------------------------------------------------

def init_params(key, in_dim=384, class_num=3):
    """Synthetic params; shapes match the PyTorch module (weights stored (in, out))."""
    a = in_dim // 2
    k1, k2, k3, k4, k5, k6, k7 = jax.random.split(key, 7)
    s1 = 1.0 / jnp.sqrt(in_dim)
    s3 = 1.0 / jnp.sqrt(a)
    return {
        "w1": jax.random.uniform(k1, (in_dim, in_dim), jnp.float32, -s1, s1),
        "w2": jax.random.uniform(k2, (in_dim, a), jnp.float32, -s1, s1),
        "w3": jax.random.uniform(k3, (a, class_num), jnp.float32, -s3, s3),
        "g1": 1.0 + 0.1 * jax.random.normal(k4, (1, in_dim), jnp.float32),
        "b1": 0.1 * jax.random.normal(k5, (1, in_dim), jnp.float32),
        "g2": 1.0 + 0.1 * jax.random.normal(k6, (1, a), jnp.float32),
        "b2": 0.1 * jax.random.normal(k7, (1, a), jnp.float32),
    }


def reference_forward(x, params):
    """Pure-JAX reference with the same numerics as the kernel (bf16 matmul
    operands, f32 accumulation, training-mode BN)."""
    def bn(h, g, b):
        mean = jnp.mean(h, axis=0, keepdims=True)
        var = jnp.maximum(jnp.mean(h * h, axis=0, keepdims=True) - mean * mean, 0.0)
        return (h - mean) * jax.lax.rsqrt(var + BN_EPS) * g + b

    def mm(a, w):
        return jnp.dot(a.astype(jnp.bfloat16), w.astype(jnp.bfloat16),
                       preferred_element_type=jnp.float32)

    h = mm(x, params["w1"])
    h = jnp.maximum(bn(h, params["g1"], params["b1"]), 0.0)
    h = mm(h, params["w2"])
    h = jnp.maximum(bn(h, params["g2"], params["b2"]), 0.0)
    return mm(h, params["w3"])


if __name__ == "__main__":
    key = jax.random.PRNGKey(0)
    kx, kp = jax.random.split(key)

    # Small but non-trivial shapes: exercises batch streaming (4 tiles of 64),
    # padded-row masking (200 -> 256 rows) and lane padding (192 -> 256, 3 -> 128).
    B, in_dim, class_num = 200, 384, 3
    x = jax.random.normal(kx, (B, in_dim), jnp.float32)
    params = init_params(kp, in_dim=in_dim, class_num=class_num)

    fwd = jax.jit(functools.partial(simsiam_stage3_forward, batch_tile=64))
    out = jax.block_until_ready(fwd(x, params))

    ref = reference_forward(x, params)
    assert out.shape == (B, class_num)
    max_err = float(jnp.max(jnp.abs(out - ref)))
    assert jnp.allclose(out, ref, atol=1e-2, rtol=1e-2), f"max abs err {max_err}"

    print("KERNEL_OK")
</pallas_src>

<mosaic_0001>
module attributes {stable_mosaic.version = 11 : i64} {
  func.func @_fused_predictor_kernel(%arg0: i32, %arg1: memref<64x384xbf16, #tpu.memory_space<vmem>>, %arg2: memref<384x384xbf16, #tpu.memory_space<vmem>>, %arg3: memref<384x256xbf16, #tpu.memory_space<vmem>>, %arg4: memref<256x128xbf16, #tpu.memory_space<vmem>>, %arg5: memref<1x384xf32, #tpu.memory_space<vmem>>, %arg6: memref<1x384xf32, #tpu.memory_space<vmem>>, %arg7: memref<1x256xf32, #tpu.memory_space<vmem>>, %arg8: memref<1x256xf32, #tpu.memory_space<vmem>>, %arg9: memref<256x128xf32, #tpu.memory_space<vmem>>, %arg10: memref<256x384xf32, #tpu.memory_space<vmem>>, %arg11: memref<256x256xf32, #tpu.memory_space<vmem>>, %arg12: memref<1x384xf32, #tpu.memory_space<vmem>>, %arg13: memref<1x384xf32, #tpu.memory_space<vmem>>, %arg14: memref<1x256xf32, #tpu.memory_space<vmem>>, %arg15: memref<1x256xf32, #tpu.memory_space<vmem>>) attributes {dimension_semantics = [#tpu.dimension_semantics<arbitrary>], iteration_bounds = array<i64: 4>, scalar_prefetch = 0 : i64, scratch_operands = 6 : i64, tpu.core_type = #tpu.core_type<tc>, window_params = [{transform_indices = @transform_0, window_bounds = array<i64: 64, 384>}, {pipeline_mode = #tpu.pipeline_mode<synchronous>, transform_indices = @transform_1, window_bounds = array<i64: 384, 384>}, {pipeline_mode = #tpu.pipeline_mode<synchronous>, transform_indices = @transform_2, window_bounds = array<i64: 384, 256>}, {pipeline_mode = #tpu.pipeline_mode<synchronous>, transform_indices = @transform_3, window_bounds = array<i64: 256, 128>}, {pipeline_mode = #tpu.pipeline_mode<synchronous>, transform_indices = @transform_4, window_bounds = array<i64: 1, 384>}, {pipeline_mode = #tpu.pipeline_mode<synchronous>, transform_indices = @transform_5, window_bounds = array<i64: 1, 384>}, {pipeline_mode = #tpu.pipeline_mode<synchronous>, transform_indices = @transform_6, window_bounds = array<i64: 1, 256>}, {pipeline_mode = #tpu.pipeline_mode<synchronous>, transform_indices = @transform_7, window_bounds = array<i64: 1, 256>}, {pipeline_mode = #tpu.pipeline_mode<synchronous>, transform_indices = @transform_8, window_bounds = array<i64: 256, 128>}]} {
    %c0_i32 = arith.constant 0 : i32
    %0 = arith.cmpi eq, %arg0, %c0_i32 : i32
    %1 = arith.extui %0 : i1 to i32
    %c0_i32_0 = arith.constant 0 : i32
    %2 = arith.cmpi ne, %1, %c0_i32_0 : i32
    scf.if %2 {
      %cst_16 = arith.constant 0.000000e+00 : f32
      %24 = vector.broadcast %cst_16 : f32 to vector<1x384xf32>
      %c0_17 = arith.constant 0 : index
      %c0_18 = arith.constant 0 : index
      %25 = vector.load %arg12[%c0_17, %c0_18] : memref<1x384xf32, #tpu.memory_space<vmem>>, vector<1x384xf32>
      tpu.vector_store %arg12[%c0_17, %c0_18], %24 {strides = array<i32>} : memref<1x384xf32, #tpu.memory_space<vmem>>, vector<1x384xf32>,
      %cst_19 = arith.constant 0.000000e+00 : f32
      %26 = vector.broadcast %cst_19 : f32 to vector<1x384xf32>
      %c0_20 = arith.constant 0 : index
      %c0_21 = arith.constant 0 : index
      %27 = vector.load %arg13[%c0_20, %c0_21] : memref<1x384xf32, #tpu.memory_space<vmem>>, vector<1x384xf32>
      tpu.vector_store %arg13[%c0_20, %c0_21], %26 {strides = array<i32>} : memref<1x384xf32, #tpu.memory_space<vmem>>, vector<1x384xf32>,
    } else {
    }
    %c64_i32 = arith.constant 64 : i32
    %3 = arith.muli %arg0, %c64_i32 : i32
    %4 = tpu.assume_multiple %3, 64 : i32
    %c0 = arith.constant 0 : index
    %c0_1 = arith.constant 0 : index
    %5 = vector.load %arg1[%c0, %c0_1] : memref<64x384xbf16, #tpu.memory_space<vmem>>, vector<64x384xbf16>
    %c0_2 = arith.constant 0 : index
    %c0_3 = arith.constant 0 : index
    %6 = vector.load %arg2[%c0_2, %c0_3] : memref<384x384xbf16, #tpu.memory_space<vmem>>, vector<384x384xbf16>
    %cst = arith.constant dense<0.000000e+00> : vector<64x384xf32>
    %7 = tpu.matmul %5, %6, %cst {dimension_numbers = #tpu.dot_dimension_numbers<[1], [0], [0], [1], [0, 0, 1, 1], [], []>} : vector<64x384xbf16>, vector<384x384xbf16>, vector<64x384xf32> -> vector<64x384xf32>
    %8 = arith.index_cast %4 : i32 to index
    %c0_4 = arith.constant 0 : index
    %9 = vector.load %arg10[%8, %c0_4] : memref<256x384xf32, #tpu.memory_space<vmem>>, vector<64x384xf32>
    tpu.vector_store %arg10[%8, %c0_4], %7 {strides = array<i32>} : memref<256x384xf32, #tpu.memory_space<vmem>>, vector<64x384xf32>,
    %c0_5 = arith.constant 0 : index
    %c0_6 = arith.constant 0 : index
    %10 = vector.load %arg12[%c0_5, %c0_6] : memref<1x384xf32, #tpu.memory_space<vmem>>, vector<1x384xf32>
    %cst_7 = arith.constant dense<0.000000e+00> : vector<384xf32>
    %11 = vector.multi_reduction <add>, %7, %cst_7 [0] : vector<64x384xf32> to vector<384xf32>
    %12 = vector.shape_cast %11 : vector<384xf32> to vector<1x384xf32>
    %13 = arith.addf %10, %12 : vector<1x384xf32>
    %c0_8 = arith.constant 0 : index
    %c0_9 = arith.constant 0 : index
    %14 = vector.load %arg12[%c0_8, %c0_9] : memref<1x384xf32, #tpu.memory_space<vmem>>, vector<1x384xf32>
    tpu.vector_store %arg12[%c0_8, %c0_9], %13 {strides = array<i32>} : memref<1x384xf32, #tpu.memory_space<vmem>>, vector<1x384xf32>,
    %c0_10 = arith.constant 0 : index
    %c0_11 = arith.constant 0 : index
    %15 = vector.load %arg13[%c0_10, %c0_11] : memref<1x384xf32, #tpu.memory_space<vmem>>, vector<1x384xf32>
    %16 = arith.mulf %7, %7 : vector<64x384xf32>
    %cst_12 = arith.constant dense<0.000000e+00> : vector<384xf32>
    %17 = vector.multi_reduction <add>, %16, %cst_12 [0] : vector<64x384xf32> to vector<384xf32>
    %18 = vector.shape_cast %17 : vector<384xf32> to vector<1x384xf32>
    %19 = arith.addf %15, %18 : vector<1x384xf32>
    %c0_13 = arith.constant 0 : index
    %c0_14 = arith.constant 0 : index
    %20 = vector.load %arg13[%c0_13, %c0_14] : memref<1x384xf32, #tpu.memory_space<vmem>>, vector<1x384xf32>
    tpu.vector_store %arg13[%c0_13, %c0_14], %19 {strides = array<i32>} : memref<1x384xf32, #tpu.memory_space<vmem>>, vector<1x384xf32>,
    %c3_i32 = arith.constant 3 : i32
    %21 = arith.cmpi eq, %arg0, %c3_i32 : i32
    %22 = arith.extui %21 : i1 to i32
    %c0_i32_15 = arith.constant 0 : i32
    %23 = arith.cmpi ne, %22, %c0_i32_15 : i32
    scf.if %23 {
      %c0_16 = arith.constant 0 : index
      %c0_17 = arith.constant 0 : index
      %24 = vector.load %arg12[%c0_16, %c0_17] : memref<1x384xf32, #tpu.memory_space<vmem>>, vector<1x384xf32>
      %cst_18 = arith.constant 5.000000e-03 : f32
      %25 = vector.broadcast %cst_18 : f32 to vector<1x384xf32>
      %26 = arith.mulf %24, %25 : vector<1x384xf32>
      %c0_19 = arith.constant 0 : index
      %c0_20 = arith.constant 0 : index
      %27 = vector.load %arg13[%c0_19, %c0_20] : memref<1x384xf32, #tpu.memory_space<vmem>>, vector<1x384xf32>
      %cst_21 = arith.constant 5.000000e-03 : f32
      %28 = vector.broadcast %cst_21 : f32 to vector<1x384xf32>
      %29 = arith.mulf %27, %28 : vector<1x384xf32>
      %30 = arith.mulf %26, %26 : vector<1x384xf32>
      %31 = arith.subf %29, %30 : vector<1x384xf32>
      %cst_22 = arith.constant 0.000000e+00 : f32
      %32 = vector.broadcast %cst_22 : f32 to vector<1x384xf32>
      %33 = arith.maximumf %31, %32 : vector<1x384xf32>
      %c0_23 = arith.constant 0 : index
      %c0_24 = arith.constant 0 : index
      %34 = vector.load %arg5[%c0_23, %c0_24] : memref<1x384xf32, #tpu.memory_space<vmem>>, vector<1x384xf32>
      %cst_25 = arith.constant 9.99999974E-6 : f32
      %35 = vector.broadcast %cst_25 : f32 to vector<1x384xf32>
      %36 = arith.addf %33, %35 : vector<1x384xf32>
      %37 = math.rsqrt %36 : vector<1x384xf32>
      %38 = arith.mulf %34, %37 : vector<1x384xf32>
      %c0_26 = arith.constant 0 : index
      %c0_27 = arith.constant 0 : index
      %39 = vector.load %arg6[%c0_26, %c0_27] : memref<1x384xf32, #tpu.memory_space<vmem>>, vector<1x384xf32>
      %40 = arith.mulf %26, %38 : vector<1x384xf32>
      %41 = arith.subf %39, %40 : vector<1x384xf32>
      %cst_28 = arith.constant 0.000000e+00 : f32
      %42 = vector.broadcast %cst_28 : f32 to vector<1x256xf32>
      %c0_29 = arith.constant 0 : index
      %c0_30 = arith.constant 0 : index
      %43 = vector.load %arg14[%c0_29, %c0_30] : memref<1x256xf32, #tpu.memory_space<vmem>>, vector<1x256xf32>
      tpu.vector_store %arg14[%c0_29, %c0_30], %42 {strides = array<i32>} : memref<1x256xf32, #tpu.memory_space<vmem>>, vector<1x256xf32>,
      %cst_31 = arith.constant 0.000000e+00 : f32
      %44 = vector.broadcast %cst_31 : f32 to vector<1x256xf32>
      %c0_32 = arith.constant 0 : index
      %c0_33 = arith.constant 0 : index
      %45 = vector.load %arg15[%c0_32, %c0_33] : memref<1x256xf32, #tpu.memory_space<vmem>>, vector<1x256xf32>
      tpu.vector_store %arg15[%c0_32, %c0_33], %44 {strides = array<i32>} : memref<1x256xf32, #tpu.memory_space<vmem>>, vector<1x256xf32>,
      %c0_i32_34 = arith.constant 0 : i32
      %c4_i32 = arith.constant 4 : i32
      %46 = arith.addi %c0_i32_34, %c4_i32 : i32
      %c1_i32 = arith.constant 1 : i32
      scf.for %arg16 = %c0_i32_34 to %46 step %c1_i32  : i32 {
        %c1_i32_52 = arith.constant 1 : i32
        %66 = arith.muli %arg16, %c1_i32_52 : i32
        %c0_i32_53 = arith.constant 0 : i32
        %67 = arith.addi %c0_i32_53, %66 : i32
        %c64_i32_54 = arith.constant 64 : i32
        %68 = arith.muli %67, %c64_i32_54 : i32
        %69 = tpu.assume_multiple %68, 64 : i32
        %70 = arith.index_cast %69 : i32 to index
        %c0_55 = arith.constant 0 : index
        %71 = vector.load %arg10[%70, %c0_55] : memref<256x384xf32, #tpu.memory_space<vmem>>, vector<64x384xf32>
        %72 = vector.broadcast %38 : vector<1x384xf32> to vector<64x384xf32>
        %73 = arith.mulf %71, %72 : vector<64x384xf32>
        %74 = vector.broadcast %41 : vector<1x384xf32> to vector<64x384xf32>
        %75 = arith.addf %73, %74 : vector<64x384xf32>
        %cst_56 = arith.constant 0.000000e+00 : f32
        %76 = vector.broadcast %cst_56 : f32 to vector<64x384xf32>
        %77 = arith.maximumf %75, %76 : vector<64x384xf32>
        %78 = tpu.iota {dimensions = array<i32: 0>} : vector<64x1xi32>
        %79 = vector.broadcast %69 : i32 to vector<64x1xi32>
        %80 = arith.addi %79, %78 : vector<64x1xi32>
        %c200_i32 = arith.constant 200 : i32
        %81 = vector.broadcast %c200_i32 : i32 to vector<64x1xi32>
        %82 = arith.cmpi slt, %80, %81 : vector<64x1xi32>
        %cst_57 = arith.constant 0.000000e+00 : f32
        %83 = vector.shape_cast %82 : vector<64x1xi1> to vector<64x1xi1>
        %84 = vector.broadcast %83 : vector<64x1xi1> to vector<64x384xi1>
        %85 = vector.broadcast %cst_57 : f32 to vector<64x384xf32>
        %86 = arith.select %84, %77, %85 : vector<64x384xi1>, vector<64x384xf32>
        %87 = arith.truncf %86 : vector<64x384xf32> to vector<64x384xbf16>
        %c0_58 = arith.constant 0 : index
        %c0_59 = arith.constant 0 : index
        %88 = vector.load %arg3[%c0_58, %c0_59] : memref<384x256xbf16, #tpu.memory_space<vmem>>, vector<384x256xbf16>
        %cst_60 = arith.constant dense<0.000000e+00> : vector<64x256xf32>
        %89 = tpu.matmul %87, %88, %cst_60 {dimension_numbers = #tpu.dot_dimension_numbers<[1], [0], [0], [1], [0, 0, 1, 1], [], []>} : vector<64x384xbf16>, vector<384x256xbf16>, vector<64x256xf32> -> vector<64x256xf32>
        %90 = arith.index_cast %69 : i32 to index
        %c0_61 = arith.constant 0 : index
        %91 = vector.load %arg11[%90, %c0_61] : memref<256x256xf32, #tpu.memory_space<vmem>>, vector<64x256xf32>
        tpu.vector_store %arg11[%90, %c0_61], %89 {strides = array<i32>} : memref<256x256xf32, #tpu.memory_space<vmem>>, vector<64x256xf32>,
        %c0_62 = arith.constant 0 : index
        %c0_63 = arith.constant 0 : index
        %92 = vector.load %arg14[%c0_62, %c0_63] : memref<1x256xf32, #tpu.memory_space<vmem>>, vector<1x256xf32>
        %cst_64 = arith.constant dense<0.000000e+00> : vector<256xf32>
        %93 = vector.multi_reduction <add>, %89, %cst_64 [0] : vector<64x256xf32> to vector<256xf32>
        %94 = vector.shape_cast %93 : vector<256xf32> to vector<1x256xf32>
        %95 = arith.addf %92, %94 : vector<1x256xf32>
        %c0_65 = arith.constant 0 : index
        %c0_66 = arith.constant 0 : index
        %96 = vector.load %arg14[%c0_65, %c0_66] : memref<1x256xf32, #tpu.memory_space<vmem>>, vector<1x256xf32>
        tpu.vector_store %arg14[%c0_65, %c0_66], %95 {strides = array<i32>} : memref<1x256xf32, #tpu.memory_space<vmem>>, vector<1x256xf32>,
        %c0_67 = arith.constant 0 : index
        %c0_68 = arith.constant 0 : index
        %97 = vector.load %arg15[%c0_67, %c0_68] : memref<1x256xf32, #tpu.memory_space<vmem>>, vector<1x256xf32>
        %98 = arith.mulf %89, %89 : vector<64x256xf32>
        %cst_69 = arith.constant dense<0.000000e+00> : vector<256xf32>
        %99 = vector.multi_reduction <add>, %98, %cst_69 [0] : vector<64x256xf32> to vector<256xf32>
        %100 = vector.shape_cast %99 : vector<256xf32> to vector<1x256xf32>
        %101 = arith.addf %97, %100 : vector<1x256xf32>
        %c0_70 = arith.constant 0 : index
        %c0_71 = arith.constant 0 : index
        %102 = vector.load %arg15[%c0_70, %c0_71] : memref<1x256xf32, #tpu.memory_space<vmem>>, vector<1x256xf32>
        tpu.vector_store %arg15[%c0_70, %c0_71], %101 {strides = array<i32>} : memref<1x256xf32, #tpu.memory_space<vmem>>, vector<1x256xf32>,
      }
      %c4_i32_35 = arith.constant 4 : i32
      %c0_36 = arith.constant 0 : index
      %c0_37 = arith.constant 0 : index
      %47 = vector.load %arg14[%c0_36, %c0_37] : memref<1x256xf32, #tpu.memory_space<vmem>>, vector<1x256xf32>
      %cst_38 = arith.constant 5.000000e-03 : f32
      %48 = vector.broadcast %cst_38 : f32 to vector<1x256xf32>
      %49 = arith.mulf %47, %48 : vector<1x256xf32>
      %c0_39 = arith.constant 0 : index
      %c0_40 = arith.constant 0 : index
      %50 = vector.load %arg15[%c0_39, %c0_40] : memref<1x256xf32, #tpu.memory_space<vmem>>, vector<1x256xf32>
      %cst_41 = arith.constant 5.000000e-03 : f32
      %51 = vector.broadcast %cst_41 : f32 to vector<1x256xf32>
      %52 = arith.mulf %50, %51 : vector<1x256xf32>
      %53 = arith.mulf %49, %49 : vector<1x256xf32>
      %54 = arith.subf %52, %53 : vector<1x256xf32>
      %cst_42 = arith.constant 0.000000e+00 : f32
      %55 = vector.broadcast %cst_42 : f32 to vector<1x256xf32>
      %56 = arith.maximumf %54, %55 : vector<1x256xf32>
      %c0_43 = arith.constant 0 : index
      %c0_44 = arith.constant 0 : index
      %57 = vector.load %arg7[%c0_43, %c0_44] : memref<1x256xf32, #tpu.memory_space<vmem>>, vector<1x256xf32>
      %cst_45 = arith.constant 9.99999974E-6 : f32
      %58 = vector.broadcast %cst_45 : f32 to vector<1x256xf32>
      %59 = arith.addf %56, %58 : vector<1x256xf32>
      %60 = math.rsqrt %59 : vector<1x256xf32>
      %61 = arith.mulf %57, %60 : vector<1x256xf32>
      %c0_46 = arith.constant 0 : index
      %c0_47 = arith.constant 0 : index
      %62 = vector.load %arg8[%c0_46, %c0_47] : memref<1x256xf32, #tpu.memory_space<vmem>>, vector<1x256xf32>
      %63 = arith.mulf %49, %61 : vector<1x256xf32>
      %64 = arith.subf %62, %63 : vector<1x256xf32>
      %c0_i32_48 = arith.constant 0 : i32
      %c4_i32_49 = arith.constant 4 : i32
      %65 = arith.addi %c0_i32_48, %c4_i32_49 : i32
      %c1_i32_50 = arith.constant 1 : i32
      scf.for %arg16 = %c0_i32_48 to %65 step %c1_i32_50  : i32 {
        %c1_i32_52 = arith.constant 1 : i32
        %66 = arith.muli %arg16, %c1_i32_52 : i32
        %c0_i32_53 = arith.constant 0 : i32
        %67 = arith.addi %c0_i32_53, %66 : i32
        %c64_i32_54 = arith.constant 64 : i32
        %68 = arith.muli %67, %c64_i32_54 : i32
        %69 = tpu.assume_multiple %68, 64 : i32
        %70 = arith.index_cast %69 : i32 to index
        %c0_55 = arith.constant 0 : index
        %71 = vector.load %arg11[%70, %c0_55] : memref<256x256xf32, #tpu.memory_space<vmem>>, vector<64x256xf32>
        %72 = vector.broadcast %61 : vector<1x256xf32> to vector<64x256xf32>
        %73 = arith.mulf %71, %72 : vector<64x256xf32>
        %74 = vector.broadcast %64 : vector<1x256xf32> to vector<64x256xf32>
        %75 = arith.addf %73, %74 : vector<64x256xf32>
        %cst_56 = arith.constant 0.000000e+00 : f32
        %76 = vector.broadcast %cst_56 : f32 to vector<64x256xf32>
        %77 = arith.maximumf %75, %76 : vector<64x256xf32>
        %78 = arith.truncf %77 : vector<64x256xf32> to vector<64x256xbf16>
        %c0_57 = arith.constant 0 : index
        %c0_58 = arith.constant 0 : index
        %79 = vector.load %arg4[%c0_57, %c0_58] : memref<256x128xbf16, #tpu.memory_space<vmem>>, vector<256x128xbf16>
        %cst_59 = arith.constant dense<0.000000e+00> : vector<64x128xf32>
        %80 = tpu.matmul %78, %79, %cst_59 {dimension_numbers = #tpu.dot_dimension_numbers<[1], [0], [0], [1], [0, 0, 1, 1], [], []>} : vector<64x256xbf16>, vector<256x128xbf16>, vector<64x128xf32> -> vector<64x128xf32>
        %81 = arith.index_cast %69 : i32 to index
        %c0_60 = arith.constant 0 : index
        %82 = vector.load %arg9[%81, %c0_60] : memref<256x128xf32, #tpu.memory_space<vmem>>, vector<64x128xf32>
        tpu.vector_store %arg9[%81, %c0_60], %80 {strides = array<i32>} : memref<256x128xf32, #tpu.memory_space<vmem>>, vector<64x128xf32>,
      }
      %c4_i32_51 = arith.constant 4 : i32
    } else {
    }
    return
  }
  func.func @transform_0(%arg0: i32) -> (i32, i32) {
    %c0_i32 = arith.constant 0 : i32
    %c0_i32_0 = arith.constant 0 : i32
    return %arg0, %c0_i32 : i32, i32
  }
  func.func @transform_1(%arg0: i32) -> (i32, i32) {
    %c0_i32 = arith.constant 0 : i32
    %c0_i32_0 = arith.constant 0 : i32
    %c0_i32_1 = arith.constant 0 : i32
    return %c0_i32, %c0_i32_0 : i32, i32
  }
  func.func @transform_2(%arg0: i32) -> (i32, i32) {
    %c0_i32 = arith.constant 0 : i32
    %c0_i32_0 = arith.constant 0 : i32
    %c0_i32_1 = arith.constant 0 : i32
    return %c0_i32, %c0_i32_0 : i32, i32
  }
  func.func @transform_3(%arg0: i32) -> (i32, i32) {
    %c0_i32 = arith.constant 0 : i32
    %c0_i32_0 = arith.constant 0 : i32
    %c0_i32_1 = arith.constant 0 : i32
    return %c0_i32, %c0_i32_0 : i32, i32
  }
  func.func @transform_4(%arg0: i32) -> (i32, i32) {
    %c0_i32 = arith.constant 0 : i32
    %c0_i32_0 = arith.constant 0 : i32
    %c0_i32_1 = arith.constant 0 : i32
    return %c0_i32, %c0_i32_0 : i32, i32
  }
  func.func @transform_5(%arg0: i32) -> (i32, i32) {
    %c0_i32 = arith.constant 0 : i32
    %c0_i32_0 = arith.constant 0 : i32
    %c0_i32_1 = arith.constant 0 : i32
    return %c0_i32, %c0_i32_0 : i32, i32
  }
  func.func @transform_6(%arg0: i32) -> (i32, i32) {
    %c0_i32 = arith.constant 0 : i32
    %c0_i32_0 = arith.constant 0 : i32
    %c0_i32_1 = arith.constant 0 : i32
    return %c0_i32, %c0_i32_0 : i32, i32
  }
  func.func @transform_7(%arg0: i32) -> (i32, i32) {
    %c0_i32 = arith.constant 0 : i32
    %c0_i32_0 = arith.constant 0 : i32
    %c0_i32_1 = arith.constant 0 : i32
    return %c0_i32, %c0_i32_0 : i32, i32
  }
  func.func @transform_8(%arg0: i32) -> (i32, i32) {
    %c0_i32 = arith.constant 0 : i32
    %c0_i32_0 = arith.constant 0 : i32
    %c0_i32_1 = arith.constant 0 : i32
    return %c0_i32, %c0_i32_0 : i32, i32
  }
}

</mosaic_0001>

<bundles_post_ra>
// kernel: simsiam_stage3_forward.1
= control target key start
LH: loop header
LB: loop body
LE: loop exit
PB: predicated region body
PF: predicated region fallthrough
CT: control target
= control target key end

     0   :  { %s3428_s27 = smov 0   ;;  %s4783_s0 = inlined_call_operand.vmem [shape: bf16[256,384], index: 0, kind: input, shape index: {}]   ;;  %s4784_s1 = inlined_call_operand.vmem [shape: bf16[384,384], index: 1, kind: input, shape index: {}]   ;;  %s4785_s2 = inlined_call_operand.vmem [shape: bf16[384,256], index: 2, kind: input, shape index: {}]   ;;  %s4786_s3 = inlined_call_operand.vmem [shape: bf16[256,128], index: 3, kind: input, shape index: {}]   ;;  %s4787_s4 = inlined_call_operand.vmem [shape: f32[1,384], index: 4, kind: input, shape index: {}]   ;;  %s4788_s5 = inlined_call_operand.vmem [shape: f32[1,384], index: 5, kind: input, shape index: {}]   ;;  %s4789_s6 = inlined_call_operand.vmem [shape: f32[1,256], index: 6, kind: input, shape index: {}]   ;;  %s4790_s7 = inlined_call_operand.vmem [shape: f32[1,256], index: 7, kind: input, shape index: {}]   ;;  %s4791_s8 = inlined_call_operand.vmem [shape: f32[256,128], index: 8, kind: output, shape index: {}]  }
   0x1 LB: > { %s3434_s28 = sadd.s32 4294967295, %s3371_s27   ;;  %p2446_p0 = scmp.ge.s32.totalorder %s3371_s27, 1  ;;  %s3371_s27 = sphi %s3428_s27, %s18_s27  }
   0x2   : > { %p259_p1 = scmp.lt.s32.totalorder %s3371_s27, 5 }
   0x4   : > { %p260_p2 = pnand %p2446_p0, %p259_p1 }
   0x5   : > { %s2447_s29 = sshll.u32 (!%p260_p2), %s3434_s28, 3  ;;  %p2449_p4 = scmp.ne.s32.totalorder (!%p260_p2), %s3434_s28, 0 }
   0x6   : > { %263 = sbr.rel (%p260_p2) target bundleno = 910 (0x38e), region = 52  ;;  %p290_p3 = scmp.lt.s32.totalorder (!%p260_p2), %s2447_s29, 31 }
   0xb   : > { %s4803_s29 = smov (!%p290_p3, %s2447_s29), 31  ;;  %299 = sbr.rel (%p2449_p4) target bundleno = 21 (0x15), region = 56 }
   0xc   : > { %s3326_s30 = smul.u32 12, %s4803_s29 }
   0xe   : > { %s3442_s11 = scalar_lea.vmem %s4783_s0, %s3326_s30 }
  0x10   : > { %v300_v0 = vlaneseq  ;;  %v3381_v1 = vmov 0.0  }
  0x12   : > { %vm302_vm0 = vcmp.lt.s32.totalorder %v300_v0, 384 }
  0x13   : > { %304 = vst.msk [vmem:[#allocation4] sm:$0x7] %vm302_vm0, %v3381_v1 }
  0x14   : > { %305 = vst.msk [vmem:[#allocation5] sm:$0x7] %vm302_vm0, %v3381_v1 }
  0x15 PF: > { %v2585_v2 = vld [vmem:[%s4784_s1 + $0xa8] sm:$0xf]  ;;  %v3160_v3 = vld [vmem:[%s4784_s1 + $0xb0] sm:$0xf0]  ;;  %v3159_v7 = vld [vmem:[%s4784_s1 + $0xac] sm:$0xf] }
  0x16   : > { %v2777_v4 = vld [vmem:[%s4784_s1 + $0x228] sm:$0xf]  ;;  %v2586_v5 = vor.u32 %v3160_v3, %v2585_v2  ;;  %v3208_v6 = vld [vmem:[%s4784_s1 + $0x230] sm:$0xf0]  ;;  %v2587_v8 = vld [vmem:[%s4784_s1 + $0xb4] sm:$0xf0] }
  0x17   : > { %v2778_v9 = vor.u32 %v3208_v6, %v2777_v4  ;;  %v2590_v10 = vor.u32 %v3159_v7, %v2587_v8  ;;  %v2573_v11 = vld [vmem:[%s4784_s1 + $0x90] sm:$0xf]  ;;  %v3157_v12 = vld [vmem:[%s4784_s1 + $0x98] sm:$0xf0]  ;;  %v3156_v16 = vld [vmem:[%s4784_s1 + $0x94] sm:$0xf] }
  0x18   : > { %v2765_v13 = vld [vmem:[%s4784_s1 + $0x210] sm:$0xf]  ;;  %867 = vmatpush.bf16.msra.mxu0 %v2586_v5  ;;  %3278 = vmatpush.bf16.msra.mxu1 %v2586_v5  ;;  %v2574_v14 = vor.u32 %v3157_v12, %v2573_v11  ;;  %v3205_v15 = vld [vmem:[%s4784_s1 + $0x218] sm:$0xf0]  ;;  %v2575_v17 = vld [vmem:[%s4784_s1 + $0x9c] sm:$0xf0] }
  0x19   : > { %925 = vmatpush.bf16.msra.mxu2 %v2778_v9  ;;  %954 = vmatpush.bf16.msra.mxu3 %v2590_v10  ;;  %v2766_v18 = vor.u32 %v3205_v15, %v2765_v13  ;;  %v2578_v19 = vor.u32 %v3156_v16, %v2575_v17  ;;  %v2561_v20 = vld [vmem:[%s4784_s1 + $0x78] sm:$0xf]  ;;  %v3154_v21 = vld [vmem:[%s4784_s1 + $0x80] sm:$0xf0]  ;;  %v3153_v24 = vld [vmem:[%s4784_s1 + $0x7c] sm:$0xf] }
  0x1a   : > { %v2753_v22 = vld [vmem:[%s4784_s1 + $0x1f8] sm:$0xf]  ;;  %v3202_v23 = vld [vmem:[%s4784_s1 + $0x200] sm:$0xf0]  ;;  %v2563_v25 = vld [vmem:[%s4784_s1 + $0x84] sm:$0xf0]  ;;  %v2562_v26 = vor.u32 %v3154_v21, %v2561_v20 }
  0x1b   : > { %v2754_v27 = vor.u32 %v3202_v23, %v2753_v22  ;;  %v2566_v28 = vor.u32 %v3153_v24, %v2563_v25  ;;  %v2549_v29 = vld [vmem:[%s4784_s1 + $0x60] sm:$0xf]  ;;  %v3151_v30 = vld [vmem:[%s4784_s1 + $0x68] sm:$0xf0]  ;;  %v3150_v33 = vld [vmem:[%s4784_s1 + $0x64] sm:$0xf] }
  0x1c   : > { %868 = vmatpush.bf16.msra.mxu0 %v2574_v14  ;;  %3279 = vmatpush.bf16.msra.mxu1 %v2574_v14  ;;  %v2741_v31 = vld [vmem:[%s4784_s1 + $0x1e0] sm:$0xf]  ;;  %v3199_v32 = vld [vmem:[%s4784_s1 + $0x1e8] sm:$0xf0]  ;;  %v2551_v34 = vld [vmem:[%s4784_s1 + $0x6c] sm:$0xf0]  ;;  %v2550_v35 = vor.u32 %v3151_v30, %v2549_v29 }
  0x1d   : > { %926 = vmatpush.bf16.msra.mxu2 %v2766_v18  ;;  %955 = vmatpush.bf16.msra.mxu3 %v2578_v19  ;;  %v2742_v36 = vor.u32 %v3199_v32, %v2741_v31  ;;  %v2554_v37 = vor.u32 %v3150_v33, %v2551_v34  ;;  %v2537_v38 = vld [vmem:[%s4784_s1 + $0x48] sm:$0xf]  ;;  %v3148_v39 = vld [vmem:[%s4784_s1 + $0x50] sm:$0xf0]  ;;  %v3147_v42 = vld [vmem:[%s4784_s1 + $0x4c] sm:$0xf] }
  0x1e   : > { %v2729_v40 = vld [vmem:[%s4784_s1 + $0x1c8] sm:$0xf]  ;;  %v3196_v41 = vld [vmem:[%s4784_s1 + $0x1d0] sm:$0xf0]  ;;  %v2539_v43 = vld [vmem:[%s4784_s1 + $0x54] sm:$0xf0]  ;;  %v2538_v44 = vor.u32 %v3148_v39, %v2537_v38 }
  0x1f   : > { %v2730_v45 = vor.u32 %v3196_v41, %v2729_v40  ;;  %v2542_v46 = vor.u32 %v3147_v42, %v2539_v43  ;;  %v2525_v47 = vld [vmem:[%s4784_s1 + $0x30] sm:$0xf]  ;;  %v3145_v48 = vld [vmem:[%s4784_s1 + $0x38] sm:$0xf0]  ;;  %v3144_v51 = vld [vmem:[%s4784_s1 + $0x34] sm:$0xf] }
  0x20   : > { %869 = vmatpush.bf16.msra.mxu0 %v2562_v26  ;;  %3280 = vmatpush.bf16.msra.mxu1 %v2562_v26  ;;  %v2717_v49 = vld [vmem:[%s4784_s1 + $0x1b0] sm:$0xf]  ;;  %v3193_v50 = vld [vmem:[%s4784_s1 + $0x1b8] sm:$0xf0]  ;;  %v2527_v52 = vld [vmem:[%s4784_s1 + $0x3c] sm:$0xf0]  ;;  %v2526_v53 = vor.u32 %v3145_v48, %v2525_v47 }
  0x21   : > { %927 = vmatpush.bf16.msra.mxu2 %v2754_v27  ;;  %956 = vmatpush.bf16.msra.mxu3 %v2566_v28  ;;  %v2718_v54 = vor.u32 %v3193_v50, %v2717_v49  ;;  %v2530_v55 = vor.u32 %v3144_v51, %v2527_v52  ;;  %v2513_v56 = vld [vmem:[%s4784_s1 + $0x18] sm:$0xf]  ;;  %v3142_v57 = vld [vmem:[%s4784_s1 + $0x20] sm:$0xf0]  ;;  %v3141_v60 = vld [vmem:[%s4784_s1 + $0x1c] sm:$0xf] }
  0x22   : > { %v2705_v58 = vld [vmem:[%s4784_s1 + $0x198] sm:$0xf]  ;;  %v3190_v59 = vld [vmem:[%s4784_s1 + $0x1a0] sm:$0xf0]  ;;  %v2515_v61 = vld [vmem:[%s4784_s1 + $0x24] sm:$0xf0]  ;;  %v2514_v62 = vor.u32 %v3142_v57, %v2513_v56 }
  0x23   : > { %v2501_v63 = vld [vmem:[%s4784_s1] sm:$0xf]  ;;  %v2706_v0 = vor.u32 %v3190_v59, %v2705_v58  ;;  %v2518_v1 = vor.u32 %v3141_v60, %v2515_v61  ;;  %v3139_v2 = vld [vmem:[%s4784_s1 + $0x8] sm:$0xf0]  ;;  %v2681_v6 = vld [vmem:[%s4784_s1 + $0x168] sm:$0xf] }
  0x24   : > { %870 = vmatpush.bf16.msra.mxu0 %v2550_v35  ;;  %3281 = vmatpush.bf16.msra.mxu1 %v2550_v35  ;;  %v2693_v3 = vld [vmem:[%s4784_s1 + $0x180] sm:$0xf]  ;;  %v3187_v4 = vld [vmem:[%s4784_s1 + $0x188] sm:$0xf0]  ;;  %v3184_v7 = vld [vmem:[%s4784_s1 + $0x170] sm:$0xf0]  ;;  %v2502_v12 = vor.u32 %v3139_v2, %v2501_v63 }
  0x25   : > { %928 = vmatpush.bf16.msra.mxu2 %v2742_v36  ;;  %957 = vmatpush.bf16.msra.mxu3 %v2554_v37  ;;  %v2453_v5 = vld [vmem:[%s3442_s11] sm:$0xf]  ;;  %v3138_v8 = vld [vmem:[%s4784_s1 + $0x4] sm:$0xf]  ;;  %v2503_v9 = vld [vmem:[%s4784_s1 + $0xc] sm:$0xf0]  ;;  %v2694_v16 = vor.u32 %v3187_v4, %v2693_v3  ;;  %v2682_v17 = vor.u32 %v3184_v7, %v2681_v6 }
  0x26   : > { %v3183_v10 = vld [vmem:[%s4784_s1 + $0x16c] sm:$0xf]  ;;  %v2683_v11 = vld [vmem:[%s4784_s1 + $0x174] sm:$0xf0]  ;;  %v2477_v14 = vld [vmem:[%s3442_s11 + $0x30] sm:$0xf]  ;;  %v2506_v21 = vor.u32 %v3138_v8, %v2503_v9 }
  0x27   : > { %v3127_v13 = vld [vmem:[%s3442_s11 + $0x8] sm:$0xf0]  ;;  %v3133_v15 = vld [vmem:[%s3442_s11 + $0x38] sm:$0xf0]  ;;  %v2461_v18 = vld [vmem:[%s3442_s11 + $0x8] sm:$0xf]  ;;  %v2686_v22 = vor.u32 %v3183_v10, %v2683_v11 }
  0x28   : > { %871 = vmatpush.bf16.msra.mxu0 %v2538_v44  ;;  %3282 = vmatpush.bf16.msra.mxu1 %v2538_v44  ;;  %v3128_v19 = vld [vmem:[%s3442_s11 + $0x10] sm:$0xf0]  ;;  %v2669_v20 = vld [vmem:[%s4784_s1 + $0x150] sm:$0xf]  ;;  %v3181_v23 = vld [vmem:[%s4784_s1 + $0x158] sm:$0xf0]  ;;  %v3619_v26 = vor.u32 %v3127_v13, %v2453_v5  ;;  %v3621_v27 = vor.u32 %v3133_v15, %v2477_v14 }
  0x29   : > { %929 = vmatpush.bf16.msra.mxu2 %v2730_v45  ;;  %958 = vmatpush.bf16.msra.mxu3 %v2542_v46  ;;  %v3180_v24 = vld [vmem:[%s4784_s1 + $0x154] sm:$0xf]  ;;  %v2671_v25 = vld [vmem:[%s4784_s1 + $0x15c] sm:$0xf0]  ;;  %v2593_v28 = vld [vmem:[%s4784_s1 + $0xb0] sm:$0xf]  ;;  %v3632_v31 = vor.u32 %v3128_v19, %v2461_v18  ;;  %v2670_v33 = vor.u32 %v3181_v23, %v2669_v20 }
  0x2a   : > { %v3161_v29 = vld [vmem:[%s4784_s1 + $0xb8] sm:$0xf0]  ;;  %v2689_v30 = vld [vmem:[%s4784_s1 + $0x170] sm:$0xf]  ;;  %v2674_v35 = vor.u32 %v3180_v24, %v2671_v25  ;;  %v2657_v36 = vld [vmem:[%s4784_s1 + $0x138] sm:$0xf] }
  0x2b   : > { %v3185_v32 = vld [vmem:[%s4784_s1 + $0x178] sm:$0xf0]  ;;  %v3178_v37 = vld [vmem:[%s4784_s1 + $0x140] sm:$0xf0]  ;;  %v2594_v39 = vor.u32 %v3161_v29, %v2593_v28  ;;  %v2659_v40 = vld [vmem:[%s4784_s1 + $0x144] sm:$0xf0] }
  0x2c   : > { %872 = vmatpush.bf16.msra.mxu0 %v2526_v53  ;;  %3283 = vmatpush.bf16.msra.mxu1 %v2526_v53  ;;  %v2690_v34 = vor.u32 %v3185_v32, %v2689_v30  ;;  %v3177_v38 = vld [vmem:[%s4784_s1 + $0x13c] sm:$0xf]  ;;  %v2581_v41 = vld [vmem:[%s4784_s1 + $0x98] sm:$0xf]  ;;  %v3158_v42 = vld [vmem:[%s4784_s1 + $0xa0] sm:$0xf0]  ;;  %v2658_v44 = vor.u32 %v3178_v37, %v2657_v36 }
  0x2d   : > { %930 = vmatpush.bf16.msra.mxu2 %v2718_v54  ;;  %959 = vmatpush.bf16.msra.mxu3 %v2530_v55  ;;  %v2677_v43 = vld [vmem:[%s4784_s1 + $0x158] sm:$0xf]  ;;  %v2645_v45 = vld [vmem:[%s4784_s1 + $0x120] sm:$0xf]  ;;  %v3175_v46 = vld [vmem:[%s4784_s1 + $0x128] sm:$0xf0]  ;;  %v2662_v48 = vor.u32 %v3177_v38, %v2659_v40  ;;  %v2582_v51 = vor.u32 %v3158_v42, %v2581_v41 }
  0x2e   : > { %v3182_v47 = vld [vmem:[%s4784_s1 + $0x160] sm:$0xf0]  ;;  %v2647_v50 = vld [vmem:[%s4784_s1 + $0x12c] sm:$0xf0]  ;;  %v2665_v53 = vld [vmem:[%s4784_s1 + $0x140] sm:$0xf]  ;;  %v2646_v58 = vor.u32 %v3175_v46, %v2645_v45 }
  0x2f   : > { %v3174_v49 = vld [vmem:[%s4784_s1 + $0x124] sm:$0xf]  ;;  %v2678_v52 = vor.u32 %v3182_v47, %v2677_v43  ;;  %v2569_v54 = vld [vmem:[%s4784_s1 + $0x80] sm:$0xf]  ;;  %v3155_v55 = vld [vmem:[%s4784_s1 + $0x88] sm:$0xf0] }
  0x30   : > { %873 = vmatpush.bf16.msra.mxu0 %v2514_v62  ;;  %3284 = vmatpush.bf16.msra.mxu1 %v2514_v62  ;;  %v3179_v56 = vld [vmem:[%s4784_s1 + $0x148] sm:$0xf0]  ;;  %v2650_v59 = vor.u32 %v3174_v49, %v2647_v50  ;;  %v2465_v60 = vld [vmem:[%s3442_s11 + $0x18] sm:$0xf]  ;;  %v2633_v61 = vld [vmem:[%s4784_s1 + $0x108] sm:$0xf] }
  0x31   : > { %931 = vmatpush.bf16.msra.mxu2 %v2706_v0  ;;  %960 = vmatpush.bf16.msra.mxu3 %v2518_v1  ;;  %v2666_v57 = vor.u32 %v3179_v56, %v2665_v53  ;;  %v3172_v62 = vld [vmem:[%s4784_s1 + $0x110] sm:$0xf0]  ;;  %v3171_v63 = vld [vmem:[%s4784_s1 + $0x10c] sm:$0xf]  ;;  %v2570_v0 = vor.u32 %v3155_v55, %v2569_v54  ;;  %v2635_v1 = vld [vmem:[%s4784_s1 + $0x114] sm:$0xf0] }
  0x32   : > { %v2557_v2 = vld [vmem:[%s4784_s1 + $0x68] sm:$0xf]  ;;  %v3152_v3 = vld [vmem:[%s4784_s1 + $0x70] sm:$0xf0]  ;;  %v3130_v4 = vld [vmem:[%s3442_s11 + $0x20] sm:$0xf0]  ;;  %v2634_v7 = vor.u32 %v3172_v62, %v2633_v61  ;;  %v2638_v10 = vor.u32 %v3171_v63, %v2635_v1 }
  0x33   : > { %v2489_v5 = vld [vmem:[%s3442_s11 + $0x48] sm:$0xf]  ;;  %v3136_v6 = vld [vmem:[%s3442_s11 + $0x50] sm:$0xf0]  ;;  %v2473_v8 = vld [vmem:[%s3442_s11 + $0x20] sm:$0xf]  ;;  %v2558_v14 = vor.u32 %v3152_v3, %v2557_v2  ;;  %v3722_v15 = vor.u32 %v3130_v4, %v2465_v60 }
  0x34   : > { %874 = vmatpush.bf16.msra.mxu0 %v2502_v12  ;;  %3285 = vmatpush.bf16.msra.mxu1 %v2502_v12  ;;  %v3131_v9 = vld [vmem:[%s3442_s11 + $0x28] sm:$0xf0]  ;;  %v2621_v11 = vld [vmem:[%s4784_s1 + $0xf0] sm:$0xf]  ;;  %v3169_v12 = vld [vmem:[%s4784_s1 + $0xf8] sm:$0xf0] }
  0x35   : > { %932 = vmatpush.bf16.msra.mxu2 %v2694_v16  ;;  %961 = vmatpush.bf16.msra.mxu3 %v2506_v21  ;;  %v3168_v13 = vld [vmem:[%s4784_s1 + $0xf4] sm:$0xf]  ;;  %v3724_v16 = vor.u32 %v3136_v6, %v2489_v5  ;;  %v2545_v18 = vld [vmem:[%s4784_s1 + $0x50] sm:$0xf]  ;;  %v3149_v19 = vld [vmem:[%s4784_s1 + $0x58] sm:$0xf0]  ;;  %v3735_v20 = vor.u32 %v3131_v9, %v2473_v8  ;;  %v2622_v21 = vor.u32 %v3169_v12, %v2621_v11 }
  0x36   : > { %v2609_v24 = vld [vmem:[%s4784_s1 + $0xd8] sm:$0xf]  ;;  %v3166_v25 = vld [vmem:[%s4784_s1 + $0xe0] sm:$0xf0]  ;;  %v2546_v28 = vor.u32 %v3149_v19, %v2545_v18  ;;  %v3176_v29 = vld [vmem:[%s4784_s1 + $0x130] sm:$0xf0] }
  0x37   : > { %875 = vmatmul.bf16.vlgmr.msra.gmra.mxu0 %v3619_v26  ;;  %885 = vmatmul.bf16.vlgmr.msra.gmra.mxu1 %v3621_v27  ;;  %v3165_v30 = vld [vmem:[%s4784_s1 + $0xdc] sm:$0xf]  ;;  %v2611_v32 = vld [vmem:[%s4784_s1 + $0xe4] sm:$0xf0]  ;;  %v2610_v36 = vor.u32 %v3166_v25, %v2609_v24  ;;  %v2533_v37 = vld [vmem:[%s4784_s1 + $0x38] sm:$0xf] }
  0x38   : > { %896 = vmatpush.bf16.msrb.mxu1 %v2682_v17  ;;  %983 = vmatpush.bf16.msrb.mxu0 %v2686_v22  ;;  %v2623_v17 = vld [vmem:[%s4784_s1 + $0xfc] sm:$0xf0]  ;;  %v2653_v22 = vld [vmem:[%s4784_s1 + $0x128] sm:$0xf]  ;;  %v3146_v38 = vld [vmem:[%s4784_s1 + $0x40] sm:$0xf0]  ;;  %v2614_v40 = vor.u32 %v3165_v30, %v2611_v32 }
  0x39   : > { %933 = vmatmul.bf16.vlgmr.msra.gmra.mxu2 %v3632_v31  ;;  %1070 = vmatpush.bf16.msrb.mxu3 %v2690_v34  ;;  %v2626_v23 = vor.u32 %v3168_v13, %v2623_v17  ;;  %v2597_v34 = vld [vmem:[%s4784_s1 + $0xc0] sm:$0xf]  ;;  %v3162_v41 = vld [vmem:[%s4784_s1 + $0xc4] sm:$0xf]  ;;  %v2599_v42 = vld [vmem:[%s4784_s1 + $0xcc] sm:$0xf0]  ;;  %v2534_v43 = vor.u32 %v3146_v38, %v2533_v37 }
  0x3a   : > { %962 = vmatmul.bf16.vlgmr.msra.gmra.mxu3 %v3619_v26  ;;  %1041 = vmatpush.bf16.msrb.mxu2 %v2594_v39  ;;  %v2641_v39 = vld [vmem:[%s4784_s1 + $0x110] sm:$0xf]  ;;  %v3207_v45 = vld [vmem:[%s4784_s1 + $0x22c] sm:$0xf]  ;;  %v2779_v46 = vld [vmem:[%s4784_s1 + $0x234] sm:$0xf0]  ;;  %v2602_v55 = vor.u32 %v3162_v41, %v2599_v42 }
  0x3b   : > { %v2785_v47 = vld [vmem:[%s4784_s1 + $0x230] sm:$0xf]  ;;  %v3209_v49 = vld [vmem:[%s4784_s1 + $0x238] sm:$0xf0]  ;;  %v2629_v50 = vld [vmem:[%s4784_s1 + $0xf8] sm:$0xf]  ;;  %v2782_v56 = vor.u32 %v3207_v45, %v2779_v46 }
  0x3c   : > { %897 = vmatpush.bf16.msrb.mxu1 %v2670_v33  ;;  %984 = vmatpush.bf16.msrb.mxu0 %v2674_v35  ;;  %v2654_v33 = vor.u32 %v3176_v29, %v2653_v22  ;;  %v3163_v35 = vld [vmem:[%s4784_s1 + $0xc8] sm:$0xf0]  ;;  %v2521_v53 = vld [vmem:[%s4784_s1 + $0x20] sm:$0xf]  ;;  %v3126_v61 = vld [vmem:[%s3442_s11 + $0x4] sm:$0xf] }
  0x3d   : > { %1071 = vmatpush.bf16.msrb.mxu3 %v2678_v52  ;;  %v2598_v52 = vor.u32 %v3163_v35, %v2597_v34  ;;  %v3143_v54 = vld [vmem:[%s4784_s1 + $0x28] sm:$0xf0]  ;;  %v2455_v62 = vld [vmem:[%s3442_s11 + $0xc] sm:$0xf0]  ;;  %v2485_v63 = vld [vmem:[%s3442_s11 + $0x38] sm:$0xf] }
  0x3e   : > { %1042 = vmatpush.bf16.msrb.mxu2 %v2582_v51  ;;  %v3170_v51 = vld [vmem:[%s4784_s1 + $0x100] sm:$0xf0]  ;;  %v2773_v2 = vld [vmem:[%s4784_s1 + $0x218] sm:$0xf]  ;;  %v3201_v5 = vld [vmem:[%s4784_s1 + $0x1fc] sm:$0xf]  ;;  %v3832_v8 = vor.u32 %v3126_v61, %v2455_v62 }
  0x3f   : > { %v2630_v60 = vor.u32 %v3170_v51, %v2629_v50  ;;  %v3134_v1 = vld [vmem:[%s3442_s11 + $0x40] sm:$0xf0]  ;;  %v2509_v6 = vld [vmem:[%s4784_s1 + $0x8] sm:$0xf]  ;;  %v3167_v11 = vld [vmem:[%s4784_s1 + $0xe8] sm:$0xf0] }
  0x40   : > { %898 = vmatpush.bf16.msrb.mxu1 %v2658_v44  ;;  %985 = vmatpush.bf16.msrb.mxu0 %v2662_v48  ;;  %v3173_v44 = vld [vmem:[%s4784_s1 + $0x118] sm:$0xf0]  ;;  %v3206_v3 = vld [vmem:[%s4784_s1 + $0x220] sm:$0xf0]  ;;  %v2755_v9 = vld [vmem:[%s4784_s1 + $0x204] sm:$0xf0]  ;;  %v3843_v12 = vor.u32 %v3134_v1, %v2485_v63 }
  0x41   : > { %1072 = vmatpush.bf16.msrb.mxu3 %v2666_v57  ;;  %v2642_v48 = vor.u32 %v3173_v44, %v2641_v39  ;;  %v3204_v57 = vld [vmem:[%s4784_s1 + $0x214] sm:$0xf]  ;;  %v2774_v13 = vor.u32 %v3206_v3, %v2773_v2  ;;  %v2761_v17 = vld [vmem:[%s4784_s1 + $0x200] sm:$0xf]  ;;  %v3203_v18 = vld [vmem:[%s4784_s1 + $0x208] sm:$0xf0]  ;;  %v2758_v19 = vor.u32 %v3201_v5, %v2755_v9 }
  0x42   : > { %1043 = vmatpush.bf16.msrb.mxu2 %v2570_v0  ;;  %v2522_v0 = vor.u32 %v3143_v54, %v2521_v53  ;;  %v2605_v24 = vld [vmem:[%s4784_s1 + $0xc8] sm:$0xf]  ;;  %v3164_v25 = vld [vmem:[%s4784_s1 + $0xd0] sm:$0xf0]  ;;  %v3195_v34 = vld [vmem:[%s4784_s1 + $0x1cc] sm:$0xf] }
  0x43   : > { %v2749_v29 = vld [vmem:[%s4784_s1 + $0x1e8] sm:$0xf]  ;;  %v3200_v30 = vld [vmem:[%s4784_s1 + $0x1f0] sm:$0xf0]  ;;  %v2731_v35 = vld [vmem:[%s4784_s1 + $0x1d4] sm:$0xf0] }
  0x44   : > { %899 = vmatpush.bf16.msrb.mxu1 %v2646_v58  ;;  %986 = vmatpush.bf16.msrb.mxu0 %v2650_v59  ;;  %v2767_v58 = vld [vmem:[%s4784_s1 + $0x21c] sm:$0xf0]  ;;  %v2786_v59 = vor.u32 %v3209_v49, %v2785_v47  ;;  %v2737_v37 = vld [vmem:[%s4784_s1 + $0x1d0] sm:$0xf]  ;;  %v3197_v38 = vld [vmem:[%s4784_s1 + $0x1d8] sm:$0xf0]  ;;  %v2734_v39 = vor.u32 %v3195_v34, %v2731_v35 }
  0x45   : > { %1073 = vmatpush.bf16.msrb.mxu3 %v2654_v33  ;;  %v2770_v4 = vor.u32 %v3204_v57, %v2767_v58  ;;  %v2606_v33 = vor.u32 %v3164_v25, %v2605_v24  ;;  %v2719_v41 = vld [vmem:[%s4784_s1 + $0x1bc] sm:$0xf0]  ;;  %v3129_v42 = vld [vmem:[%s3442_s11 + $0x1c] sm:$0xf]  ;;  %v2738_v44 = vor.u32 %v3197_v38, %v2737_v37  ;;  %v2497_v45 = vld [vmem:[%s3442_s11 + $0x50] sm:$0xf] }
  0x46   : > { %1044 = vmatpush.bf16.msrb.mxu2 %v2558_v14  ;;  %v3137_v46 = vld [vmem:[%s3442_s11 + $0x58] sm:$0xf0]  ;;  %v2707_v51 = vld [vmem:[%s4784_s1 + $0x1a4] sm:$0xf0]  ;;  %v2725_v53 = vld [vmem:[%s4784_s1 + $0x1b8] sm:$0xf] }
  0x47   : > { %880 = vmatmul.bf16.gmra.mxu0 %v3722_v15  ;;  %890 = vmatmul.bf16.gmra.mxu1 %v3724_v16  ;;  %v3895_v49 = vor.u32 %v3137_v46, %v2497_v45  ;;  %v3189_v50 = vld [vmem:[%s4784_s1 + $0x19c] sm:$0xf]  ;;  %v3194_v54 = vld [vmem:[%s4784_s1 + $0x1c0] sm:$0xf0]  ;;  %v2695_v57 = vld [vmem:[%s4784_s1 + $0x18c] sm:$0xf0] }
  0x48   : > { %900 = vmatpush.bf16.msrb.mxu1 %v2634_v7  ;;  %987 = vmatpush.bf16.msrb.mxu0 %v2638_v10  ;;  %v3140_v7 = vld [vmem:[%s4784_s1 + $0x10] sm:$0xf0]  ;;  %v2617_v10 = vld [vmem:[%s4784_s1 + $0xe0] sm:$0xf]  ;;  %v2701_v62 = vld [vmem:[%s4784_s1 + $0x188] sm:$0xf] }
  0x49   : > { %938 = vmatmul.bf16.gmra.mxu2 %v3735_v20  ;;  %1074 = vmatpush.bf16.msrb.mxu3 %v2642_v48  ;;  %v2510_v14 = vor.u32 %v3140_v7, %v2509_v6  ;;  %v2618_v22 = vor.u32 %v3167_v11, %v2617_v10  ;;  %v2713_v58 = vld [vmem:[%s4784_s1 + $0x1a0] sm:$0xf]  ;;  %v3188_v63 = vld [vmem:[%s4784_s1 + $0x190] sm:$0xf0]  ;;  %v2491_v5 = vld [vmem:[%s3442_s11 + $0x54] sm:$0xf0] }
  0x4a   : > { %967 = vmatmul.bf16.gmra.mxu3 %v3722_v15  ;;  %1045 = vmatpush.bf16.msrb.mxu2 %v2546_v28  ;;  %v2762_v28 = vor.u32 %v3203_v18, %v2761_v17  ;;  %v2479_v1 = vld [vmem:[%s3442_s11 + $0x3c] sm:$0xf0]  ;;  %v2702_v2 = vor.u32 %v3188_v63, %v2701_v62  ;;  %vm1202_vm1 = vcmask 1040384   ;;  %vm1204_vm2 = vcmask 1041408   ;;  %p2788_p5 = scmp.ne.s32.totalorder %s3434_s28, 3 }
  0x4b   : > { %s4062_s21 = smov (!%p2788_p5), 0  }
  0x4c   : > { %901 = vmatpush.bf16.msrb.mxu1 %v2622_v21  ;;  %988 = vmatpush.bf16.msrb.mxu0 %v2626_v23  ;;  %v3198_v21 = vld [vmem:[%s4784_s1 + $0x1e4] sm:$0xf]  ;;  %v2743_v23 = vld [vmem:[%s4784_s1 + $0x1ec] sm:$0xf0] }
  0x4d   : > { %1075 = vmatpush.bf16.msrb.mxu3 %v2630_v60  ;;  %v2746_v32 = vor.u32 %v3198_v21, %v2743_v23 }
  0x4e   : > { %1046 = vmatpush.bf16.msrb.mxu2 %v2534_v43  ;;  %v2467_v43 = vld [vmem:[%s3442_s11 + $0x24] sm:$0xf0] }
  0x4f   : > { %v2470_v48 = vor.u32 %v3129_v42, %v2467_v43 }
  0x50   : > { %902 = vmatpush.bf16.msrb.mxu1 %v2610_v36  ;;  %989 = vmatpush.bf16.msrb.mxu0 %v2614_v40  ;;  %v2750_v36 = vor.u32 %v3200_v30, %v2749_v29  ;;  %v3192_v40 = vld [vmem:[%s4784_s1 + $0x1b4] sm:$0xf] }
  0x51   : > { %1076 = vmatpush.bf16.msrb.mxu3 %v2618_v22  ;;  %v2722_v47 = vor.u32 %v3192_v40, %v2719_v41 }
  0x52   : > { %1047 = vmatpush.bf16.msrb.mxu2 %v2522_v0  ;;  %v3132_v0 = vld [vmem:[%s3442_s11 + $0x34] sm:$0xf] }
  0x53   : > { %v2482_v3 = vor.u32 %v3132_v0, %v2479_v1 }
  0x54   : > { %903 = vmatpush.bf16.msrb.mxu1 %v2598_v52  ;;  %990 = vmatpush.bf16.msrb.mxu0 %v2602_v55  ;;  %v2710_v52 = vor.u32 %v3189_v50, %v2707_v51  ;;  %v3186_v55 = vld [vmem:[%s4784_s1 + $0x184] sm:$0xf] }
  0x55   : > { %1077 = vmatpush.bf16.msrb.mxu3 %v2606_v33  ;;  %v2698_v60 = vor.u32 %v3186_v55, %v2695_v57 }
  0x56   : > { %1048 = vmatpush.bf16.msrb.mxu2 %v2510_v14 }
  0x57   : > { %904 = vmatmul.bf16.vlgmr.msrb.gmra.mxu1 %v3832_v8  ;;  %991 = vmatmul.bf16.vlgmr.msrb.gmra.mxu0 %v3832_v8 }
  0x58   : > { %1012 = vmatpush.bf16.msra.mxu1 %v2782_v56  ;;  %1099 = vmatpush.bf16.msra.mxu0 %v2786_v59  ;;  %v2726_v56 = vor.u32 %v3194_v54, %v2725_v53 }
  0x59   : > { %943 = vmatmul.bf16.gmra.mxu2 %v3843_v12 }
  0x5a   : > { %972 = vmatmul.bf16.gmra.mxu3 %v3621_v27  ;;  %3286 = vmatpush.bf16.msra.mxu2 %v2786_v59  ;;  %v3191_v59 = vld [vmem:[%s4784_s1 + $0x1a8] sm:$0xf0] }
  0x5b   : > { %v2714_v61 = vor.u32 %v3191_v59, %v2713_v58 }
  0x5c   : > { %1013 = vmatpush.bf16.msra.mxu1 %v2770_v4  ;;  %1100 = vmatpush.bf16.msra.mxu0 %v2774_v13  ;;  %v3135_v4 = vld [vmem:[%s3442_s11 + $0x4c] sm:$0xf]  ;;  %s2450_s11 = sshll.u32 %s3434_s28, 6 }
  0x5d   : > { %v2494_v6 = vor.u32 %v3135_v4, %v2491_v5  ;;  %s1128_s15 = sshra.s32 %s2450_s11, 3 }
  0x5e   : > { %3287 = vmatpush.bf16.msra.mxu2 %v2774_v13  ;;  %s3210_s16 = smul.u32 24, %s1128_s15 }
  0x60   : > { %1014 = vmatpush.bf16.msra.mxu1 %v2758_v19  ;;  %1101 = vmatpush.bf16.msra.mxu0 %v2762_v28  ;;  %s3963_s17 = scalar_lea.vmem [#allocation2], %s3210_s16 }
  0x62   : > { %3288 = vmatpush.bf16.msra.mxu2 %v2762_v28 }
  0x64   : > { %1015 = vmatpush.bf16.msra.mxu1 %v2746_v32  ;;  %1102 = vmatpush.bf16.msra.mxu0 %v2750_v36 }
  0x66   : > { %3289 = vmatpush.bf16.msra.mxu2 %v2750_v36 }
  0x67   : > { %909 = vmatmul.bf16.gmra.mxu1 %v2470_v48  ;;  %996 = vmatmul.bf16.gmra.mxu0 %v2470_v48 }
  0x68   : > { %1016 = vmatpush.bf16.msra.mxu1 %v2734_v39  ;;  %1103 = vmatpush.bf16.msra.mxu0 %v2738_v44 }
  0x69   : > { %948 = vmatmul.bf16.gmra.mxu2 %v3895_v49 }
  0x6a   : > { %977 = vmatmul.bf16.gmra.mxu3 %v3724_v16  ;;  %3290 = vmatpush.bf16.msra.mxu2 %v2738_v44 }
  0x6c   : > { %1017 = vmatpush.bf16.msra.mxu1 %v2722_v47  ;;  %1104 = vmatpush.bf16.msra.mxu0 %v2726_v56 }
  0x6e   : > { %3291 = vmatpush.bf16.msra.mxu2 %v2726_v56 }
  0x70   : > { %1018 = vmatpush.bf16.msra.mxu1 %v2710_v52  ;;  %1105 = vmatpush.bf16.msra.mxu0 %v2714_v61 }
  0x72   : > { %3292 = vmatpush.bf16.msra.mxu2 %v2714_v61 }
  0x74   : > { %1019 = vmatpush.bf16.msra.mxu1 %v2698_v60  ;;  %1106 = vmatpush.bf16.msra.mxu0 %v2702_v2 }
  0x76   : > { %3293 = vmatpush.bf16.msra.mxu2 %v2702_v2 }
  0x77   : > { %914 = vmatmul.bf16.gmra.mxu1 %v2482_v3  ;;  %1001 = vmatmul.bf16.gmra.mxu0 %v2482_v3 }
  0x79   : > { %1049 = vmatmul.bf16.vlgmr.msrb.gmra.mxu2 %v3619_v26 }
  0x7a   : > { %1078 = vmatmul.bf16.vlgmr.msrb.gmra.mxu3 %v3832_v8 }
  0x87   : > { %919 = vmatmul.bf16.gmra.mxu1 %v2494_v6  ;;  %1006 = vmatmul.bf16.gmra.mxu0 %v2494_v6 }
  0x89   : > { %1054 = vmatmul.bf16.gmra.mxu2 %v3722_v15 }
  0x8a   : > { %1083 = vmatmul.bf16.gmra.mxu3 %v2470_v48 }
  0x97   : > { %1020 = vmatmul.bf16.vlgmr.msra.gmra.mxu1 %v3632_v31  ;;  %1107 = vmatmul.bf16.vlgmr.msra.gmra.mxu0 %v3632_v31 }
  0x99   : > { %1059 = vmatmul.bf16.gmra.mxu2 %v3621_v27 }
  0x9a   : > { %1088 = vmatmul.bf16.gmra.mxu3 %v2482_v3 }
  0xa7   : > { %1025 = vmatmul.bf16.gmra.mxu1 %v3735_v20  ;;  %1112 = vmatmul.bf16.gmra.mxu0 %v3735_v20 }
  0xa9   : > { %1064 = vmatmul.bf16.gmra.mxu2 %v3724_v16 }
  0xaa   : > { %1093 = vmatmul.bf16.gmra.mxu3 %v2494_v6 }
  0xb4   : > { %v876_v26 = vpop.f32.mrf.mxu0  ;;  %v886_v7 = vpop.f32.mrf.mxu1 }
  0xb7   : > { %1030 = vmatmul.bf16.gmra.mxu1 %v3843_v12  ;;  %1117 = vmatmul.bf16.gmra.mxu0 %v3843_v12 }
  0xb9   : > { %1122 = vmatmul.bf16.vlgmr.msra.gmra.mxu2 %v3895_v49 }
  0xbc   : > { %v934_v31 = vpop.f32.mrf.mxu2  ;;  %v878_v15 = vpop.f32.mrf.mxu0 }
  0xbd   : > { %v3945_v27 = vpop.f32.mrf.mxu1  ;;  %v3947_v8 = vpop.f32.mrf.mxu3 }
  0xc4   : > { %v936_v9 = vpop.f32.mrf.mxu2  ;;  %v881_v20 = vpop.f32.mrf.mxu0 }
  0xc5   : > { %v3949_v10 = vpop.f32.mrf.mxu1  ;;  %v3951_v16 = vpop.f32.mrf.mxu3 }
  0xc7   : > { %1035 = vmatmul.bf16.gmra.mxu1 %v3895_v49 }
  0xcc   : > { %v939_v11 = vpop.f32.mrf.mxu2  ;;  %v883_v13 = vpop.f32.mrf.mxu0 }
  0xcd   : > { %v3954_v14 = vpop.f32.mrf.mxu1  ;;  %v3957_v12 = vpop.f32.mrf.mxu3 }
  0xd4   : > { %v941_v17 = vpop.f32.mrf.mxu2  ;;  %v3959_v19 = vpop.f32.mrf.mxu0 }
  0xd5   : > { %v905_v18 = vpop.f32.mrf.mxu1  ;;  %v3961_v22 = vpop.f32.mrf.mxu3 }
  0xd6   : > { %v906_v21 = vadd.f32 %v905_v18, %v876_v26 }
  0xd8   : > { %v935_v23 = vadd.f32 %v934_v31, %v906_v21 }
  0xda   : > { %1133 = vst [vmem:[%s3963_s17] sm:$0xff] %v935_v23  ;;  %v1214_v33 = vmul.f32 %v935_v23, %v935_v23 }
  0xdc   : > { %v944_v24 = vpop.f32.mrf.mxu2  ;;  %v3966_v28 = vpop.f32.mrf.mxu0 }
  0xdd   : > { %v907_v25 = vpop.f32.mrf.mxu1  ;;  %v3968_v30 = vpop.f32.mrf.mxu3 }
  0xde   : > { %v908_v29 = vadd.f32 %v907_v25, %v878_v15 }
  0xe0   : > { %v937_v32 = vadd.f32 %v936_v9, %v908_v29 }
  0xe2   : > { %1136 = vst [vmem:[%s3963_s17 + $0x18] sm:$0xff] %v937_v32  ;;  %v1158_v34 = vadd.f32 %v937_v32, %v935_v23  ;;  %v1217_v35 = vmul.f32 %v937_v32, %v937_v32 }
  0xe4   : > { %v1238_v36 = vadd.f32 %v1217_v35, %v1214_v33  ;;  %v946_v37 = vpop.f32.mrf.mxu2  ;;  %v3971_v39 = vpop.f32.mrf.mxu0 }
  0xe5   : > { %v910_v38 = vpop.f32.mrf.mxu1  ;;  %v3973_v41 = vpop.f32.mrf.mxu3 }
  0xe6   : > { %v911_v40 = vadd.f32 %v910_v38, %v881_v20 }
  0xe8   : > { %v940_v42 = vadd.f32 %v939_v11, %v911_v40 }
  0xea   : > { %1139 = vst [vmem:[%s3963_s17 + $0x30] sm:$0xff] %v940_v42  ;;  %v1159_v43 = vadd.f32 %v1158_v34, %v940_v42  ;;  %v1220_v44 = vmul.f32 %v940_v42, %v940_v42  ;;  %v993_v34 = vadd.f32 %v3959_v19, %v3947_v8 }
  0xec   : > { %v1239_v45 = vadd.f32 %v1238_v36, %v1220_v44  ;;  %v949_v46 = vpop.f32.mrf.mxu2  ;;  %v3976_v48 = vpop.f32.mrf.mxu0  ;;  %v995_v44 = vadd.f32 %v3966_v28, %v3951_v16 }
  0xed   : > { %v912_v47 = vpop.f32.mrf.mxu1  ;;  %v3978_v50 = vpop.f32.mrf.mxu3 }
  0xee   : > { %v913_v49 = vadd.f32 %v912_v47, %v883_v13 }
  0xf0   : > { %v942_v51 = vadd.f32 %v941_v17, %v913_v49 }
  0xf2   : > { %1142 = vst [vmem:[%s3963_s17 + $0x48] sm:$0xff] %v942_v51  ;;  %v1160_v52 = vadd.f32 %v1159_v43, %v942_v51  ;;  %v1223_v53 = vmul.f32 %v942_v51, %v942_v51 }
  0xf4   : > { %v1240_v54 = vadd.f32 %v1239_v45, %v1223_v53  ;;  %v951_v55 = vpop.f32.mrf.mxu2  ;;  %v3981_v57 = vpop.f32.mrf.mxu0 }
  0xf5   : > { %v915_v56 = vpop.f32.mrf.mxu1  ;;  %v3983_v59 = vpop.f32.mrf.mxu3 }
  0xf6   : > { %v916_v58 = vadd.f32 %v915_v56, %v886_v7  ;;  %v998_v56 = vadd.f32 %v3971_v39, %v3957_v12 }
  0xf8   : > { %v945_v60 = vadd.f32 %v944_v24, %v916_v58 }
  0xfa   : > { %1145 = vst [vmem:[%s3963_s17 + $0x60] sm:$0xff] %v945_v60  ;;  %v1161_v61 = vadd.f32 %v1160_v52, %v945_v60  ;;  %v1226_v62 = vmul.f32 %v945_v60, %v945_v60 }
  0xfc   : > { %v1241_v63 = vadd.f32 %v1240_v54, %v1226_v62  ;;  %v1050_v0 = vpop.f32.mrf.mxu2  ;;  %v3986_v2 = vpop.f32.mrf.mxu0 }
  0xfd   : > { %v917_v1 = vpop.f32.mrf.mxu1  ;;  %v1079_v4 = vpop.f32.mrf.mxu3 }
  0xfe   : > { %v918_v3 = vadd.f32 %v917_v1, %v3945_v27  ;;  %v1080_v35 = vadd.f32 %v1079_v4, %v1050_v0 }
 0x100   : > { %v947_v5 = vadd.f32 %v946_v37, %v918_v3  ;;  %v1000_v3 = vadd.f32 %v3976_v48, %v3961_v22 }
 0x102   : > { %1148 = vst [vmem:[%s3963_s17 + $0x78] sm:$0xff] %v947_v5  ;;  %v1162_v6 = vadd.f32 %v1161_v61, %v947_v5  ;;  %v1229_v26 = vmul.f32 %v947_v5, %v947_v5 }
 0x104   : > { %v1242_v7 = vadd.f32 %v1241_v63, %v1229_v26  ;;  %v1052_v31 = vpop.f32.mrf.mxu2  ;;  %v3990_v9 = vpop.f32.mrf.mxu0 }
 0x105   : > { %v920_v15 = vpop.f32.mrf.mxu1  ;;  %v1081_v11 = vpop.f32.mrf.mxu3 }
 0x106   : > { %v921_v20 = vadd.f32 %v920_v15, %v3949_v10  ;;  %v1082_v45 = vadd.f32 %v1081_v11, %v1052_v31  ;;  %v1003_v11 = vadd.f32 %v3981_v57, %v3968_v30 }
 0x108   : > { %v950_v13 = vadd.f32 %v949_v46, %v921_v20 }
 0x10a   : > { %1151 = vst [vmem:[%s3963_s17 + $0x90] sm:$0xff] %v950_v13  ;;  %v1163_v17 = vadd.f32 %v1162_v6, %v950_v13  ;;  %v1232_v18 = vmul.f32 %v950_v13, %v950_v13 }
 0x10c   : > { %v1243_v21 = vadd.f32 %v1242_v7, %v1232_v18  ;;  %v1055_v27 = vpop.f32.mrf.mxu2  ;;  %v3994_v24 = vpop.f32.mrf.mxu0 }
 0x10d   : > { %v922_v23 = vpop.f32.mrf.mxu1  ;;  %v1084_v29 = vpop.f32.mrf.mxu3 }
 0x10e   : > { %v923_v25 = vadd.f32 %v922_v23, %v3954_v14  ;;  %v1085_v58 = vadd.f32 %v1084_v29, %v1055_v27 }
 0x110   : > { %v952_v32 = vadd.f32 %v951_v55, %v923_v25 }
 0x112   : > { %1154 = vst [vmem:[%s3963_s17 + $0xa8] sm:$0xff] %v952_v32  ;;  %v3998_v33 = vadd.f32 %v1163_v17, %v952_v32  ;;  %v1235_v10 = vmul.f32 %v952_v32, %v952_v32 }
 0x114   : > { %v4002_v36 = vadd.f32 %v1243_v21, %v1235_v10  ;;  %v1057_v37 = vpop.f32.mrf.mxu2  ;;  %v1108_v40 = vpop.f32.mrf.mxu0 }
 0x115   : > { %v1021_v38 = vpop.f32.mrf.mxu1  ;;  %v1109_v14 = vadd.f32 %v1108_v40, %v1080_v35  ;;  %v1086_v43 = vpop.f32.mrf.mxu3  ;;  %v1005_v40 = vadd.f32 %v3986_v2, %v3973_v41 }
 0x116   : > { %v1022_v42 = vadd.f32 %v1021_v38, %v993_v34  ;;  %v1087_v4 = vadd.f32 %v1086_v43, %v1057_v37 }
 0x117   : > { %1135 = vst [vmem:[%s3963_s17 + $0x10] sm:$0xff] %v1109_v14  ;;  %v1216_v32 = vmul.f32 %v1109_v14, %v1109_v14 }
 0x118   : > { %1134 = vst [vmem:[%s3963_s17 + $0x8] sm:$0xff] %v1022_v42  ;;  %v1215_v51 = vmul.f32 %v1022_v42, %v1022_v42 }
 0x11c   : > { %v1060_v46 = vpop.f32.mrf.mxu2  ;;  %v1110_v8 = vpop.f32.mrf.mxu0 }
 0x11d   : > { %v1023_v47 = vpop.f32.mrf.mxu1  ;;  %v1111_v49 = vadd.f32 %v1110_v8, %v1082_v45  ;;  %v1089_v55 = vpop.f32.mrf.mxu3 }
 0x11e   : > { %v1024_v19 = vadd.f32 %v1023_v47, %v995_v44  ;;  %v1090_v13 = vadd.f32 %v1089_v55, %v1060_v46 }
 0x11f   : > { %1138 = vst [vmem:[%s3963_s17 + $0x28] sm:$0xff] %v1111_v49  ;;  %v1219_v23 = vmul.f32 %v1111_v49, %v1111_v49  ;;  %v1184_v10 = vadd.f32 %v1111_v49, %v1109_v14 }
 0x120   : > { %1137 = vst [vmem:[%s3963_s17 + $0x20] sm:$0xff] %v1024_v19  ;;  %v1171_v52 = vadd.f32 %v1024_v19, %v1022_v42  ;;  %v1218_v53 = vmul.f32 %v1024_v19, %v1024_v19 }
 0x121   : > { %v1264_v37 = vadd.f32 %v1219_v23, %v1216_v32 }
 0x122   : > { %v1251_v54 = vadd.f32 %v1218_v53, %v1215_v51 }
 0x124   : > { %v1062_v16 = vpop.f32.mrf.mxu2  ;;  %v1113_v60 = vpop.f32.mrf.mxu0 }
 0x125   : > { %v1026_v28 = vpop.f32.mrf.mxu1  ;;  %v1114_v62 = vadd.f32 %v1113_v60, %v1085_v58  ;;  %v1091_v5 = vpop.f32.mrf.mxu3  ;;  %v1008_v60 = vadd.f32 %v3990_v9, %v3978_v50 }
 0x126   : > { %v1027_v61 = vadd.f32 %v1026_v28, %v998_v56  ;;  %v1092_v42 = vadd.f32 %v1091_v5, %v1062_v16 }
 0x127   : > { %1141 = vst [vmem:[%s3963_s17 + $0x40] sm:$0xff] %v1114_v62  ;;  %v1222_v34 = vmul.f32 %v1114_v62, %v1114_v62  ;;  %v1185_v38 = vadd.f32 %v1184_v10, %v1114_v62 }
 0x128   : > { %1140 = vst [vmem:[%s3963_s17 + $0x38] sm:$0xff] %v1027_v61  ;;  %v1172_v63 = vadd.f32 %v1171_v52, %v1027_v61  ;;  %v1221_v0 = vmul.f32 %v1027_v61, %v1027_v61 }
 0x129   : > { %v1265_v44 = vadd.f32 %v1264_v37, %v1222_v34 }
 0x12a   : > { %v1252_v1 = vadd.f32 %v1251_v54, %v1221_v0 }
 0x12c   : > { %v1065_v6 = vpop.f32.mrf.mxu2  ;;  %v1115_v39 = vpop.f32.mrf.mxu0 }
 0x12d   : > { %v1028_v12 = vpop.f32.mrf.mxu1  ;;  %v1116_v7 = vadd.f32 %v1115_v39, %v1087_v4  ;;  %v1094_v18 = vpop.f32.mrf.mxu3 }
 0x12e   : > { %v1029_v26 = vadd.f32 %v1028_v12, %v1000_v3  ;;  %v1095_v57 = vadd.f32 %v1094_v18, %v1065_v6 }
 0x12f   : > { %1144 = vst [vmem:[%s3963_s17 + $0x58] sm:$0xff] %v1116_v7  ;;  %v1225_v30 = vmul.f32 %v1116_v7, %v1116_v7  ;;  %v1186_v45 = vadd.f32 %v1185_v38, %v1116_v7 }
 0x130   : > { %1143 = vst [vmem:[%s3963_s17 + $0x50] sm:$0xff] %v1029_v26  ;;  %v1173_v31 = vadd.f32 %v1172_v63, %v1029_v26  ;;  %v1224_v15 = vmul.f32 %v1029_v26, %v1029_v26 }
 0x131   : > { %v1266_v51 = vadd.f32 %v1265_v44, %v1225_v30 }
 0x132   : > { %v1253_v20 = vadd.f32 %v1252_v1, %v1224_v15 }
 0x134   : > { %v1067_v17 = vpop.f32.mrf.mxu2  ;;  %v1118_v48 = vpop.f32.mrf.mxu0 }
 0x135   : > { %v1031_v22 = vpop.f32.mrf.mxu1  ;;  %v1119_v27 = vadd.f32 %v1118_v48, %v1090_v13  ;;  %v1096_v53 = vpop.f32.mrf.mxu3 }
 0x136   : > { %v1032_v21 = vadd.f32 %v1031_v22, %v1003_v11  ;;  %v1097_v16 = vadd.f32 %v1096_v53, %v1067_v17  ;;  %v1010_v11 = vadd.f32 %v3994_v24, %v3983_v59 }
 0x137   : > { %1147 = vst [vmem:[%s3963_s17 + $0x70] sm:$0xff] %v1119_v27  ;;  %v1228_v46 = vmul.f32 %v1119_v27, %v1119_v27  ;;  %v1187_v52 = vadd.f32 %v1186_v45, %v1119_v27 }
 0x138   : > { %1146 = vst [vmem:[%s3963_s17 + $0x68] sm:$0xff] %v1032_v21  ;;  %v1174_v25 = vadd.f32 %v1173_v31, %v1032_v21  ;;  %v1227_v29 = vmul.f32 %v1032_v21, %v1032_v21  ;;  %v1165_v31 = vrot.slane %v3998_v33, 4 }
 0x139   : > { %v1267_v2 = vadd.f32 %v1266_v51, %v1228_v46  ;;  %v1208_v51 = vlaneseq }
 0x13a   : > { %v1254_v35 = vadd.f32 %v1253_v20, %v1227_v29  ;;  %v1245_v20 = vrot.slane %v4002_v36, 4  ;;  %v1166_v22 = vadd.f32 %v1165_v31, %v3998_v33 }
 0x13b   : > { %vm1210_vm3 = vcmp.lt.s32.totalorder %v1208_v51, 384 }
 0x13c   : > { %v1123_v43 = vpop.f32.mrf.mxu2  ;;  %v1120_v8 = vpop.f32.mrf.mxu0  ;;  %v1246_v21 = vadd.f32 %v1245_v20, %v4002_v36  ;;  %v1167_v29 = vrot.slane %v1166_v22, 2 }
 0x13d   : > { %v1124_v47 = vadd.f32 %v1123_v43, %v1095_v57  ;;  %v1033_v14 = vpop.f32.mrf.mxu1  ;;  %v1121_v49 = vadd.f32 %v1120_v8, %v1092_v42 }
 0x13e   : > { %v1034_v19 = vadd.f32 %v1033_v14, %v1005_v40  ;;  %v1168_v24 = vadd.f32 %v1167_v29, %v1166_v22 }
 0x13f   : > { %1153 = vst [vmem:[%s3963_s17 + $0xa0] sm:$0xff] %v1124_v47  ;;  %v1231_v41 = vmul.f32 %v1121_v49, %v1121_v49  ;;  %v1188_v56 = vadd.f32 %v1187_v52, %v1121_v49  ;;  %v1234_v62 = vmul.f32 %v1124_v47, %v1124_v47 }
 0x140   : > { %1149 = vst [vmem:[%s3963_s17 + $0x80] sm:$0xff] %v1034_v19  ;;  %v1175_v54 = vadd.f32 %v1174_v25, %v1034_v19  ;;  %v1230_v55 = vmul.f32 %v1034_v19, %v1034_v19  ;;  %v1169_v44 = vrot.slane %v1168_v24, 1 }
 0x141   : > { %1150 = vst [vmem:[%s3963_s17 + $0x88] sm:$0xff] %v1121_v49  ;;  %v1268_v28 = vadd.f32 %v1267_v2, %v1231_v41  ;;  %v1189_v0 = vadd.f32 %v1188_v56, %v1124_v47  ;;  %v1157_v41 = vld [vmem:[#allocation4] sm:$0x7] }
 0x142   : > { %v1255_v58 = vadd.f32 %v1254_v35, %v1230_v55  ;;  %v1247_v35 = vrot.slane %v1246_v21, 2  ;;  %v1170_v52 = vadd.f32 %v1169_v44, %v1168_v24 }
 0x143   : > { %v1269_v6 = vadd.f32 %v1268_v28, %v1234_v62 }
 0x144   : > { %v1125_v61 = vpop.f32.mrf.mxu2  ;;  %v1248_v40 = vadd.f32 %v1247_v35, %v1246_v21 }
 0x145   : > { %v1126_v63 = vadd.f32 %v1125_v61, %v1097_v16  ;;  %v1036_v1 = vpop.f32.mrf.mxu1 }
 0x146   : > { %v1037_v3 = vadd.f32 %v1036_v1, %v1008_v60  ;;  %v1249_v14 = vrot.slane %v1248_v40, 1  ;;  %v1213_v60 = vld [vmem:[#allocation5] sm:$0x7] }
 0x147   : > { %1156 = vst [vmem:[%s3963_s17 + $0xb8] sm:$0xff] %v1126_v63  ;;  %v1190_v4 = vadd.f32 %v1189_v0, %v1126_v63  ;;  %v1237_v5 = vmul.f32 %v1126_v63, %v1126_v63 }
 0x148   : > { %1152 = vst [vmem:[%s3963_s17 + $0x98] sm:$0xff] %v1037_v3  ;;  %v1176_v12 = vadd.f32 %v1175_v54, %v1037_v3  ;;  %v1233_v39 = vmul.f32 %v1037_v3, %v1037_v3  ;;  %v1250_v2 = vadd.f32 %v1249_v14, %v1248_v40 }
 0x149   : > { %v1191_v26 = vrot.slane %v1190_v4, 4  ;;  %v1270_v7 = vadd.f32 %v1269_v6, %v1237_v5 }
 0x14a   : > { %v1256_v15 = vadd.f32 %v1255_v58, %v1233_v39 }
 0x14b   : > { %v1192_v50 = vadd.f32 %v1191_v26, %v1190_v4  ;;  %v1271_v9 = vrot.slane %v1270_v7, 4 }
 0x14d   : > { %v1272_v13 = vadd.f32 %v1271_v9, %v1270_v7  ;;  %v1038_v17 = vpop.f32.mrf.mxu1  ;;  %v1193_v18 = vrot.slane %v1192_v50, 2 }
 0x14e   : > { %v1039_v48 = vadd.f32 %v1038_v17, %v1010_v11 }
 0x14f   : > { %v1273_v25 = vrot.slane %v1272_v13, 2  ;;  %v1194_v34 = vadd.f32 %v1193_v18, %v1192_v50 }
 0x150   : > { %1155 = vst [vmem:[%s3963_s17 + $0xb0] sm:$0xff] %v1039_v48  ;;  %v1177_v27 = vadd.f32 %v1176_v12, %v1039_v48  ;;  %v1236_v23 = vmul.f32 %v1039_v48, %v1039_v48 }
 0x151   : > { %v1274_v59 = vadd.f32 %v1273_v25, %v1272_v13  ;;  %v1195_v33 = vrot.slane %v1194_v34, 1 }
 0x152   : > { %v1178_v32 = vrot.slane %v1177_v27, 4  ;;  %v1257_v10 = vadd.f32 %v1256_v15, %v1236_v23 }
 0x153   : > { %v1275_v36 = vrot.slane %v1274_v59, 1  ;;  %v1196_v47 = vadd.f32 %v1195_v33, %v1194_v34 }
 0x154   : > { %v1179_v37 = vadd.f32 %v1178_v32, %v1177_v27  ;;  %v1258_v38 = vrot.slane %v1257_v10, 4 }
 0x155   : > { %v1276_v49 = vadd.f32 %v1275_v36, %v1274_v59  ;;  %v1201_v55 = vrot.slane %v1196_v47, 6 }
 0x156   : > { %v1180_v30 = vrot.slane %v1179_v37, 2  ;;  %v1259_v57 = vadd.f32 %v1258_v38, %v1257_v10 }
 0x157   : > { %v1281_v16 = vrot.slane %v1276_v49, 6 }
 0x158   : > { %v1181_v42 = vadd.f32 %v1180_v30, %v1179_v37  ;;  %v1260_v43 = vrot.slane %v1259_v57, 2 }
 0x15a   : > { %v1182_v45 = vrot.slane %v1181_v42, 1  ;;  %v1261_v46 = vadd.f32 %v1260_v43, %v1259_v57 }
 0x15c   : > { %v1183_v8 = vadd.f32 %v1182_v45, %v1181_v42  ;;  %v1262_v19 = vrot.slane %v1261_v46, 1 }
 0x15e   : > { %v1200_v53 = vrot.slane %v1183_v8, 7  ;;  %v1263_v54 = vadd.f32 %v1262_v19, %v1261_v46 }
 0x160   : > { %v1203_v56 = vsel %vm1202_vm1, %v1170_v52, %v1200_v53  ;;  %v1280_v58 = vrot.slane %v1263_v54, 7 }
 0x161   : > { %v1205_v28 = vsel %vm1204_vm2, %v1203_v56, %v1201_v55 }
 0x162   : > { %v1207_v61 = vadd.f32 %v1205_v28, %v1157_v41  ;;  %v1282_v62 = vsel %vm1202_vm1, %v1250_v2, %v1280_v58  ;;  %1290 = sbr.rel (%p2788_p5) target bundleno = 910 (0x38e), region = 60 }
 0x163   : > { %v1283_v63 = vsel %vm1204_vm2, %v1282_v62, %v1281_v16 }
 0x164   : > { %1212 = vst.msk [vmem:[#allocation4] sm:$0x7] %vm1210_vm3, %v1207_v61  ;;  %v1285_v0 = vadd.f32 %v1283_v63, %v1213_v60 }
 0x166   : > { %1286 = vst.msk [vmem:[#allocation5] sm:$0x7] %vm1210_vm3, %v1285_v0 }
 0x167   : > { %vm4043_vm4 = vcmp.lt.s32.totalorder %v1208_v51, 256  ;;  %v3382_v39 = vmov 0.0   ;;  %v1298_v13 = vld [vmem:[%s4787_s4] sm:$0x7] }
 0x168   : > { %1316 = vst.msk [vmem:[#allocation6] sm:$0x3] %vm4043_vm4, %v3382_v39  ;;  %v1311_v18 = vld [vmem:[%s4788_s5] sm:$0x7] }
 0x169   : > { %1317 = vst.msk [vmem:[#allocation7] sm:$0x3] %vm4043_vm4, %v3382_v39 }
 0x16b   : > { %v1291_v1 = vld [vmem:[#allocation4] sm:$0x7] }
 0x16c   : > { %v1292_v4 = vmul.f32 0.005, %v1291_v1 }
 0x16d   : > { %v1293_v3 = vld [vmem:[#allocation5] sm:$0x7] }
 0x16e   : > { %v1294_v5 = vmul.f32 0.005, %v1293_v3  ;;  %v1295_v12 = vmul.f32 %v1292_v4, %v1292_v4 }
 0x170   : > { %v1296_v26 = vsub.f32 %v1294_v5, %v1295_v12 }
 0x172   : > { %v1297_v7 = vmax.f32 %v1296_v26, 0.0 }
 0x174   : > { %v1299_v31 = vadd.f32 1e-05, %v1297_v7 }
 0x176   : > { %3353 = vrsqrt.f32 %v1299_v31  ;;  %vm1306_vm5 = vweird.f32 %v1299_v31 }
 0x17c   : > { %v3354_v15 = vpop.eup %3353 }
 0x17d   : > { %v1301_v50 = vmul.f32 %v3354_v15, %v1299_v31  ;;  %vm1307_vm6 = vweird.f32 %v3354_v15 }
 0x17e   : > { %vm1308_vm7 = vmor %vm1306_vm5, %vm1307_vm6 }
 0x17f   : > { %v1302_v9 = vmul.f32 %v3354_v15, %v1301_v50 }
 0x181   : > { %v1303_v20 = vmul.f32 0.5, %v1302_v9 }
 0x183   : > { %v1304_v11 = vsub.f32 1.5, %v1303_v20 }
 0x185   : > { %v1305_v17 = vmul.f32 %v3354_v15, %v1304_v11 }
 0x187   : > { %v1309_v22 = vsel %vm1308_vm7, %v3354_v15, %v1305_v17 }
 0x188   : > { %v4054_v48 = vmul.f32 %v1309_v22, %v1298_v13 }
 0x18a   : > { %v1312_v21 = vmul.f32 %v4054_v48, %v1292_v4 }
 0x18c   : > { %v4060_v27 = vsub.f32 %v1311_v18, %v1312_v21 }
 0x18d LB: >> { %v2849_v23 = vld [vmem:[%s4785_s2 + $0x70] sm:$0xf]  ;;  %v3227_v25 = vld [vmem:[%s4785_s2 + $0x74] sm:$0xf0]  ;;  %v2841_v34 = vld [vmem:[%s4785_s2 + $0x60] sm:$0xf]  ;;  %s3375_s21 = sphi %s4062_s21, %s1323_s21  }
 0x18e   : >> { %v2913_v29 = vld [vmem:[%s4785_s2 + $0xf0] sm:$0xf]  ;;  %v2850_v32 = vor.u32 %v3227_v25, %v2849_v23  ;;  %v3243_v10 = vld [vmem:[%s4785_s2 + $0xf4] sm:$0xf0]  ;;  %v3225_v35 = vld [vmem:[%s4785_s2 + $0x64] sm:$0xf0] }
 0x18f   : >> { %v2914_v37 = vor.u32 %v3243_v10, %v2913_v29  ;;  %v2905_v38 = vld [vmem:[%s4785_s2 + $0xe0] sm:$0xf]  ;;  %v3241_v59 = vld [vmem:[%s4785_s2 + $0xe4] sm:$0xf0]  ;;  %v2842_v24 = vor.u32 %v3225_v35, %v2841_v34  ;;  %v2833_v57 = vld [vmem:[%s4785_s2 + $0x50] sm:$0xf] }
 0x190   : >> { %1806 = vmatpush.bf16.msra.mxu0 %v2850_v32  ;;  %3294 = vmatpush.bf16.msra.mxu2 %v2850_v32  ;;  %v2906_v30 = vor.u32 %v3241_v59, %v2905_v38  ;;  %v3223_v33 = vld [vmem:[%s4785_s2 + $0x54] sm:$0xf0]  ;;  %v2897_v40 = vld [vmem:[%s4785_s2 + $0xd0] sm:$0xf]  ;;  %v2825_v44 = vld [vmem:[%s4785_s2 + $0x40] sm:$0xf] }
 0x191   : >> { %1835 = vmatpush.bf16.msra.mxu1 %v2914_v37  ;;  %3302 = vmatpush.bf16.msra.mxu3 %v2914_v37  ;;  %v3239_v42 = vld [vmem:[%s4785_s2 + $0xd4] sm:$0xf0]  ;;  %v2834_v43 = vor.u32 %v3223_v33, %v2833_v57  ;;  %v3221_v45 = vld [vmem:[%s4785_s2 + $0x44] sm:$0xf0]  ;;  %v2889_v46 = vld [vmem:[%s4785_s2 + $0xc0] sm:$0xf] }
 0x192   : >> { %v2898_v36 = vor.u32 %v3239_v42, %v2897_v40  ;;  %v3237_v47 = vld [vmem:[%s4785_s2 + $0xc4] sm:$0xf0]  ;;  %s2789_s11 = sshll.u32 %s3375_s21, 6  ;;  %v2826_v14 = vor.u32 %v3221_v45, %v2825_v44  ;;  %v2817_v8 = vld [vmem:[%s4785_s2 + $0x30] sm:$0xf]  ;;  %v4125_v49 = vshrl.u32 %v1208_v51, 7 }
 0x193   : >> { %v3219_v19 = vld [vmem:[%s4785_s2 + $0x34] sm:$0xf0]  ;;  %s4122_s18 = sshra.s32 %s2789_s11, 3  ;;  %v2890_v52 = vor.u32 %v3237_v47, %v2889_v46  ;;  %v2881_v53 = vld [vmem:[%s4785_s2 + $0xb0] sm:$0xf]  ;;  %v4141_v2 = vperm.slane %v4054_v48, 0  ;;  %v4143_v56 = vstv %s2789_s11 }
 0x194   : >> { %1807 = vmatpush.bf16.msra.mxu0 %v2842_v24  ;;  %3295 = vmatpush.bf16.msra.mxu2 %v2842_v24  ;;  %v3235_v54 = vld [vmem:[%s4785_s2 + $0xb4] sm:$0xf0]  ;;  %s3211_s24 = smul.u32 24, %s4122_s18  ;;  %v2809_v55 = vld [vmem:[%s4785_s2 + $0x20] sm:$0xf]  ;;  %v4146_v58 = vperm.slane %v4054_v48, 1  ;;  %v2818_v16 = vor.u32 %v3219_v19, %v2817_v8  ;;  %v1450_v15 = vadd.s32 %v4143_v56, %v4125_v49 }
 0x195   : >> { %1836 = vmatpush.bf16.msra.mxu1 %v2906_v30  ;;  %3303 = vmatpush.bf16.msra.mxu3 %v2906_v30  ;;  %v3217_v41 = vld [vmem:[%s4785_s2 + $0x24] sm:$0xf0]  ;;  %v2873_v28 = vld [vmem:[%s4785_s2 + $0xa0] sm:$0xf]  ;;  %v1442_v62 = vadd.s32 8, %v4125_v49  ;;  %v2882_v0 = vor.u32 %v3235_v54, %v2881_v53  ;;  %v1445_v4 = vadd.s32 32, %v4125_v49 }
 0x196   : >> { %s4151_s12 = scalar_lea.vmem [#allocation2], %s3211_s24  ;;  %v2810_v1 = vor.u32 %v3217_v41, %v2809_v55  ;;  %v1446_v5 = vadd.s32 40, %v4125_v49  ;;  %v3233_v26 = vld [vmem:[%s4785_s2 + $0xa4] sm:$0xf0]  ;;  %v4167_v31 = vperm.slane %v4060_v27, 0  ;;  %v4172_v50 = vperm.slane %v4060_v27, 1 }
 0x197   : >> { %v1330_v60 = vld [vmem:[%s4151_s12] sm:$0xff]  ;;  %v1333_v61 = vld [vmem:[%s4151_s12 + $0x18] sm:$0xff]  ;;  %v1331_v12 = vld [vmem:[%s4151_s12 + $0x8] sm:$0xff]  ;;  %v1451_v23 = vadd.s32 %v4143_v56, %v1442_v62  ;;  %v2874_v32 = vor.u32 %v3233_v26, %v2873_v28  ;;  %v1454_v10 = vadd.s32 %v4143_v56, %v1445_v4  ;;  %vm1458_vm8 = vcmp.lt.s32.totalorder %v1450_v15, 200  ;;  %s1323_s21 = sadd.s32 1, %s3375_s21  }
 0x198   : >> { %1808 = vmatpush.bf16.msra.mxu0 %v2834_v43  ;;  %3296 = vmatpush.bf16.msra.mxu2 %v2834_v43  ;;  %v1342_v63 = vld [vmem:[%s4151_s12 + $0x60] sm:$0xff]  ;;  %v1345_v3 = vld [vmem:[%s4151_s12 + $0x78] sm:$0xff]  ;;  %v1361_v7 = vmul.f32 %v4141_v2, %v1330_v60  ;;  %v1343_v9 = vld [vmem:[%s4151_s12 + $0x68] sm:$0xff]  ;;  %v1364_v13 = vmul.f32 %v4141_v2, %v1333_v61  ;;  %v1362_v18 = vmul.f32 %v4146_v58, %v1331_v12  ;;  %p1320_p6 = scmp.ge.s32.totalorder %s1323_s21, 4  }
 0x199   : >> { %1837 = vmatpush.bf16.msra.mxu1 %v2898_v36  ;;  %3304 = vmatpush.bf16.msra.mxu3 %v2898_v36  ;;  %v1334_v39 = vld [vmem:[%s4151_s12 + $0x20] sm:$0xff]  ;;  %v2801_v20 = vld [vmem:[%s4785_s2 + $0x10] sm:$0xf]  ;;  %v3215_v11 = vld [vmem:[%s4785_s2 + $0x14] sm:$0xf0]  ;;  %v1373_v17 = vmul.f32 %v4141_v2, %v1342_v63  ;;  %v1376_v22 = vmul.f32 %v4141_v2, %v1345_v3  ;;  %v1374_v29 = vmul.f32 %v4146_v58, %v1343_v9  ;;  %vm1459_vm9 = vcmp.lt.s32.totalorder %v1451_v23, 200 }
 0x19a   : >> { %v1346_v21 = vld [vmem:[%s4151_s12 + $0x80] sm:$0xff]  ;;  %v1365_v25 = vmul.f32 %v4146_v58, %v1334_v39  ;;  %v1455_v34 = vadd.s32 %v4143_v56, %v1446_v5  ;;  %v2802_v35 = vor.u32 %v3215_v11, %v2801_v20  ;;  %v2865_v37 = vld [vmem:[%s4785_s2 + $0x90] sm:$0xf]  ;;  %v3231_v38 = vld [vmem:[%s4785_s2 + $0x94] sm:$0xf0]  ;;  %v1392_v59 = vadd.f32 %v4167_v31, %v1361_v7  ;;  %s4654_s17 = smov (%p1320_p6), 0  }
 0x19b   : >> { %v1377_v24 = vmul.f32 %v4146_v58, %v1346_v21  ;;  %v2793_v30 = vld [vmem:[%s4785_s2] sm:$0xf]  ;;  %v3213_v57 = vld [vmem:[%s4785_s2 + $0x4] sm:$0xf0]  ;;  %v1395_v33 = vadd.f32 %v4167_v31, %v1364_v13  ;;  %v1404_v40 = vadd.f32 %v4167_v31, %v1373_v17  ;;  %v1407_v42 = vadd.f32 %v4167_v31, %v1376_v22  ;;  %v3226_v8 = vld [vmem:[%s4785_s2 + $0x74] sm:$0xf] }
 0x19c   : >> { %1809 = vmatpush.bf16.msra.mxu0 %v2826_v14  ;;  %3297 = vmatpush.bf16.msra.mxu2 %v2826_v14  ;;  %v1393_v43 = vadd.f32 %v4172_v50, %v1362_v18  ;;  %v2857_v36 = vld [vmem:[%s4785_s2 + $0x80] sm:$0xf]  ;;  %v1396_v44 = vadd.f32 %v4172_v50, %v1365_v25  ;;  %v1405_v45 = vadd.f32 %v4172_v50, %v1374_v29  ;;  %v3229_v14 = vld [vmem:[%s4785_s2 + $0x84] sm:$0xf0]  ;;  %vm1462_vm10 = vcmp.lt.s32.totalorder %v1454_v10, 200  ;;  %vm4232_vm12 = vmpackc.low %vm1459_vm9, %vm1458_vm8 }
 0x19d   : >> { %1838 = vmatpush.bf16.msra.mxu1 %v2890_v52  ;;  %3305 = vmatpush.bf16.msra.mxu3 %v2890_v52  ;;  %v1408_v46 = vadd.f32 %v4172_v50, %v1377_v24  ;;  %v2866_v47 = vor.u32 %v3231_v38, %v2865_v37  ;;  %vm1463_vm11 = vcmp.lt.s32.totalorder %v1455_v34, 200  ;;  %v2794_v19 = vor.u32 %v3213_v57, %v2793_v30  ;;  %v2851_v52 = vld [vmem:[%s4785_s2 + $0x78] sm:$0xf0]  ;;  %v2977_v53 = vld [vmem:[%s4785_s2 + $0x170] sm:$0xf]  ;;  %v1339_v17 = vld [vmem:[%s4151_s12 + $0x48] sm:$0xff] }
 0x19e   : >> { %v3259_v54 = vld [vmem:[%s4785_s2 + $0x174] sm:$0xf0]  ;;  %v1416_v55 = vmax.f32 %v1392_v59, 0.0  ;;  %v1419_v41 = vmax.f32 %v1395_v33, 0.0  ;;  %v1428_v28 = vmax.f32 %v1404_v40, 0.0  ;;  %v1431_v60 = vmax.f32 %v1407_v42, 0.0  ;;  %vm4248_vm13 = vmpackc.low %vm1463_vm11, %vm1462_vm10 }
 0x19f   : >> { %v4239_v61 = vld [vmem:[%s4785_s2 + $0xf4] sm:$0xf]  ;;  %v4244_v62 = vld [vmem:[%s4785_s2 + $0xf8] sm:$0xf0]  ;;  %v1429_v3 = vmax.f32 %v1405_v45, 0.0  ;;  %v1432_v4 = vmax.f32 %v1408_v46, 0.0  ;;  %v2858_v39 = vor.u32 %v3229_v14, %v2857_v36  ;;  %v2854_v9 = vor.u32 %v3226_v8, %v2851_v52 }
 0x1a0   : >> { %1810 = vmatpush.bf16.msra.mxu0 %v2818_v16  ;;  %3298 = vmatpush.bf16.msra.mxu2 %v2818_v16  ;;  %v3258_v5 = vld [vmem:[%s4785_s2 + $0x174] sm:$0xf]  ;;  %v2979_v26 = vld [vmem:[%s4785_s2 + $0x178] sm:$0xf0]  ;;  %v3224_v7 = vld [vmem:[%s4785_s2 + $0x64] sm:$0xf]  ;;  %v2978_v20 = vor.u32 %v3259_v54, %v2977_v53  ;;  %v4272_v22 = vpack.c.bf16 %v1419_v41, %v1416_v55  ;;  %v4274_v18 = vpack.c.bf16 %v1431_v60, %v1428_v28 }
 0x1a1   : >> { %1839 = vmatpush.bf16.msra.mxu1 %v2882_v0  ;;  %3306 = vmatpush.bf16.msra.mxu3 %v2882_v0  ;;  %v1417_v0 = vmax.f32 %v1393_v43, 0.0  ;;  %v1336_v12 = vld [vmem:[%s4151_s12 + $0x30] sm:$0xff]  ;;  %v2843_v15 = vld [vmem:[%s4785_s2 + $0x68] sm:$0xf0]  ;;  %v2969_v11 = vld [vmem:[%s4785_s2 + $0x160] sm:$0xf]  ;;  %v2918_v10 = vor.u32 %v4239_v61, %v4244_v62  ;;  %v2982_v59 = vor.u32 %v3258_v5, %v2979_v26 }
 0x1a2   : >> { %v3257_v13 = vld [vmem:[%s4785_s2 + $0x164] sm:$0xf0]  ;;  %v4279_v21 = vld [vmem:[%s4785_s2 + $0xe4] sm:$0xf]  ;;  %v4284_v23 = vld [vmem:[%s4785_s2 + $0xe8] sm:$0xf0]  ;;  %v2846_v24 = vor.u32 %v3224_v7, %v2843_v15  ;;  %v1367_v30 = vmul.f32 %v4141_v2, %v1336_v12 }
 0x1a3   : >> { %v1348_v25 = vld [vmem:[%s4151_s12 + $0x90] sm:$0xff]  ;;  %v4296_v34 = vld [vmem:[%s4785_s2 + $0x164] sm:$0xf]  ;;  %v1351_v37 = vld [vmem:[%s4151_s12 + $0xa8] sm:$0xff]  ;;  %v1444_v57 = vadd.s32 24, %v4125_v49  ;;  %v2970_v43 = vor.u32 %v3257_v13, %v2969_v11  ;;  %v2910_v36 = vor.u32 %v4279_v21, %v4284_v23 }
 0x1a4   : >> { %1811 = vmatpush.bf16.msra.mxu0 %v2810_v1  ;;  %3299 = vmatpush.bf16.msra.mxu2 %v2810_v1  ;;  %v1420_v1 = vmax.f32 %v1396_v44, 0.0  ;;  %v1337_v38 = vld [vmem:[%s4151_s12 + $0x38] sm:$0xff]  ;;  %v1340_v33 = vld [vmem:[%s4151_s12 + $0x50] sm:$0xff]  ;;  %v2971_v44 = vld [vmem:[%s4785_s2 + $0x168] sm:$0xf0]  ;;  %v1382_v52 = vmul.f32 %v4141_v2, %v1351_v37 }
 0x1a5   : >> { %1840 = vmatpush.bf16.msra.mxu1 %v2874_v32  ;;  %3307 = vmatpush.bf16.msra.mxu3 %v2874_v32  ;;  %v4289_v32 = vpack.c.bf16 %v1432_v4, %v1429_v3  ;;  %v1349_v40 = vld [vmem:[%s4151_s12 + $0x98] sm:$0xff]  ;;  %v1352_v42 = vld [vmem:[%s4151_s12 + $0xb0] sm:$0xff]  ;;  %v1368_v53 = vmul.f32 %v4146_v58, %v1337_v38  ;;  %v1371_v41 = vmul.f32 %v4146_v58, %v1340_v33  ;;  %v3220_v5 = vld [vmem:[%s4785_s2 + $0x44] sm:$0xf] }
 0x1a6   : >> { %v4287_v29 = vpack.c.bf16 %v1420_v1, %v1417_v0  ;;  %v3222_v45 = vld [vmem:[%s4785_s2 + $0x54] sm:$0xf]  ;;  %v2835_v46 = vld [vmem:[%s4785_s2 + $0x58] sm:$0xf0]  ;;  %v2961_v14 = vld [vmem:[%s4785_s2 + $0x150] sm:$0xf]  ;;  %v1380_v28 = vmul.f32 %v4146_v58, %v1349_v40  ;;  %v1383_v60 = vmul.f32 %v4146_v58, %v1352_v42  ;;  %v2974_v61 = vor.u32 %v4296_v34, %v2971_v44 }
 0x1a7   : >> { %v3255_v8 = vld [vmem:[%s4785_s2 + $0x154] sm:$0xf0]  ;;  %v3238_v54 = vld [vmem:[%s4785_s2 + $0xd4] sm:$0xf]  ;;  %v2899_v55 = vld [vmem:[%s4785_s2 + $0xd8] sm:$0xf0]  ;;  %v2838_v62 = vor.u32 %v3222_v45, %v2835_v46  ;;  %v4351_v0 = vadd.f32 %v4167_v31, %v1367_v30  ;;  %v1413_v11 = vadd.f32 %v4167_v31, %v1382_v52  ;;  %v1399_v23 = vadd.f32 %v4172_v50, %v1368_v53 }
 0x1a8   : >> { %1812 = vmatpush.bf16.msra.mxu0 %v2802_v35  ;;  %3300 = vmatpush.bf16.msra.mxu2 %v2802_v35  ;;  %v1443_v35 = vadd.s32 16, %v4125_v49  ;;  %v1448_v1 = vadd.s32 56, %v4125_v49  ;;  %v2962_v3 = vor.u32 %v3255_v8, %v2961_v14  ;;  %v3254_v4 = vld [vmem:[%s4785_s2 + $0x154] sm:$0xf]  ;;  %v2963_v58 = vld [vmem:[%s4785_s2 + $0x158] sm:$0xf0] }
 0x1a9   : >> { %1841 = vmatpush.bf16.msra.mxu1 %v2866_v47  ;;  %3308 = vmatpush.bf16.msra.mxu3 %v2866_v47  ;;  %v1370_v47 = vmul.f32 %v4141_v2, %v1339_v17  ;;  %v2827_v26 = vld [vmem:[%s4785_s2 + $0x48] sm:$0xf0]  ;;  %v2953_v7 = vld [vmem:[%s4785_s2 + $0x140] sm:$0xf]  ;;  %v3253_v15 = vld [vmem:[%s4785_s2 + $0x144] sm:$0xf0]  ;;  %v2966_v34 = vor.u32 %v3254_v4, %v2963_v58 }
 0x1aa   : >> { %v1452_v12 = vadd.s32 %v4143_v56, %v1443_v35  ;;  %v3236_v13 = vld [vmem:[%s4785_s2 + $0xc4] sm:$0xf]  ;;  %v2891_v17 = vld [vmem:[%s4785_s2 + $0xc8] sm:$0xf0]  ;;  %v1422_v37 = vmax.f32 %v4351_v0, 0.0  ;;  %v2954_v30 = vor.u32 %v3253_v15, %v2953_v7  ;;  %v1437_v42 = vmax.f32 %v1413_v11, 0.0 }
 0x1ab   : >> { %v3252_v21 = vld [vmem:[%s4785_s2 + $0x144] sm:$0xf]  ;;  %v2955_v35 = vld [vmem:[%s4785_s2 + $0x148] sm:$0xf0]  ;;  %v2945_v33 = vld [vmem:[%s4785_s2 + $0x130] sm:$0xf]  ;;  %v2894_v14 = vor.u32 %v3236_v13, %v2891_v17 }
 0x1ac   : >> { %1813 = vmatpush.bf16.msra.mxu0 %v2794_v19  ;;  %3301 = vmatpush.bf16.msra.mxu2 %v2794_v19  ;;  %v1379_v19 = vmul.f32 %v4141_v2, %v1348_v25  ;;  %v1447_v2 = vadd.s32 48, %v4125_v49  ;;  %v2902_v49 = vor.u32 %v3238_v54, %v2899_v55  ;;  %v1402_v25 = vadd.f32 %v4172_v50, %v1371_v41  ;;  %v3234_v52 = vld [vmem:[%s4785_s2 + $0xb4] sm:$0xf]  ;;  %v2883_v53 = vld [vmem:[%s4785_s2 + $0xb8] sm:$0xf0] }
 0x1ad   : >> { %1842 = vmatpush.bf16.msra.mxu1 %v2858_v39  ;;  %3309 = vmatpush.bf16.msra.mxu3 %v2858_v39  ;;  %v1453_v39 = vadd.s32 %v4143_v56, %v1444_v57  ;;  %vm1460_vm14 = vcmp.lt.s32.totalorder %v1452_v12, 200  ;;  %v2819_v57 = vld [vmem:[%s4785_s2 + $0x38] sm:$0xf0]  ;;  %v1423_v44 = vmax.f32 %v1399_v23, 0.0  ;;  %v2958_v8 = vor.u32 %v3252_v21, %v2955_v35  ;;  %v2937_v0 = vld [vmem:[%s4785_s2 + $0x120] sm:$0xf] }
 0x1ae   : >> { %v1456_v38 = vadd.s32 %v4143_v56, %v1447_v2  ;;  %v1426_v45 = vmax.f32 %v1402_v25, 0.0  ;;  %v3250_v2 = vld [vmem:[%s4785_s2 + $0x134] sm:$0xf]  ;;  %v2947_v41 = vld [vmem:[%s4785_s2 + $0x138] sm:$0xf0]  ;;  %v1335_v12 = vld [vmem:[%s4151_s12 + $0x28] sm:$0xff] }
 0x1af   : >> { %2985 = vmatmul.msk.bf16.vlgmr.msra.gmra.mxu0 %vm4232_vm12, %v4272_v22  ;;  %2991 = vmatmul.msk.bf16.vlgmr.msra.gmra.mxu2 %vm4248_vm13, %v4274_v18  ;;  %vm1461_vm15 = vcmp.lt.s32.totalorder %v1453_v39, 200  ;;  %v2886_v39 = vor.u32 %v3234_v52, %v2883_v53  ;;  %v2875_v7 = vld [vmem:[%s4785_s2 + $0xa8] sm:$0xf0]  ;;  %v4464_v15 = vperm.slane %v4060_v27, 2  ;;  %v3248_v11 = vld [vmem:[%s4785_s2 + $0x124] sm:$0xf] }
 0x1b0   : >> { %1864 = vmatpush.bf16.msrb.mxu2 %v2978_v20  ;;  %2997 = vmatmul.msk.bf16.vlgmr.msra.gmra.mxu1 %vm4232_vm12, %v4287_v29  ;;  %v1410_v20 = vadd.f32 %v4167_v31, %v1379_v19  ;;  %vm4413_vm0 = vmpackc.low %vm1461_vm15, %vm1460_vm14  ;;  %vm1464_vm2 = vcmp.lt.s32.totalorder %v1456_v38, 200  ;;  %v4451_v4 = vpack.c.bf16 %v1426_v45, %v1423_v44  ;;  %v2939_v13 = vld [vmem:[%s4785_s2 + $0x128] sm:$0xf0]  ;;  %v3214_v17 = vld [vmem:[%s4785_s2 + $0x14] sm:$0xf] }
 0x1b1   : >> { %1893 = vmatpush.bf16.msrb.mxu3 %v2854_v9  ;;  %1922 = vmatpush.bf16.msrb.mxu0 %v2918_v10  ;;  %v1401_v9 = vadd.f32 %v4167_v31, %v1370_v47  ;;  %v1411_v10 = vadd.f32 %v4172_v50, %v1380_v28  ;;  %v1414_v31 = vadd.f32 %v4172_v50, %v1383_v60  ;;  %v3216_v28 = vld [vmem:[%s4785_s2 + $0x24] sm:$0xf]  ;;  %v2803_v21 = vld [vmem:[%s4785_s2 + $0x18] sm:$0xf0]  ;;  %v2929_v23 = vld [vmem:[%s4785_s2 + $0x110] sm:$0xf] }
 0x1b2   : >> { %3003 = vmatmul.msk.bf16.vlgmr.msra.gmra.mxu3 %vm4248_vm13, %v4289_v32  ;;  %1951 = vmatpush.bf16.msrb.mxu1 %v2982_v59  ;;  %v1457_v59 = vadd.s32 %v4143_v56, %v1448_v1  ;;  %v2830_v50 = vor.u32 %v3220_v5, %v2827_v26  ;;  %v1434_v56 = vmax.f32 %v1410_v20, 0.0  ;;  %v3249_v1 = vld [vmem:[%s4785_s2 + $0x124] sm:$0xf0]  ;;  %v1332_v5 = vld [vmem:[%s4151_s12 + $0x10] sm:$0xff]  ;;  %v3232_v26 = vld [vmem:[%s4785_s2 + $0xa4] sm:$0xf]  ;;  %v2942_v35 = vor.u32 %v3248_v11, %v2939_v13 }
 0x1b3   : >> { %v1425_v40 = vmax.f32 %v1401_v9, 0.0  ;;  %v1435_v46 = vmax.f32 %v1411_v10, 0.0  ;;  %v1438_v47 = vmax.f32 %v1414_v31, 0.0  ;;  %v2938_v20 = vor.u32 %v3249_v1, %v2937_v0  ;;  %v3247_v25 = vld [vmem:[%s4785_s2 + $0x114] sm:$0xf0] }
 0x1b4   : >> { %1865 = vmatpush.bf16.msrb.mxu2 %v2970_v43  ;;  %v3251_v43 = vld [vmem:[%s4785_s2 + $0x134] sm:$0xf0]  ;;  %vm1465_vm3 = vcmp.lt.s32.totalorder %v1457_v59, 200  ;;  %v2867_v38 = vld [vmem:[%s4785_s2 + $0x98] sm:$0xf0]  ;;  %v2806_v59 = vor.u32 %v3214_v17, %v2803_v21 }
 0x1b5   : >> { %1894 = vmatpush.bf16.msrb.mxu3 %v2846_v24  ;;  %1923 = vmatpush.bf16.msrb.mxu0 %v2910_v36  ;;  %v3218_v24 = vld [vmem:[%s4785_s2 + $0x34] sm:$0xf]  ;;  %v4409_v36 = vperm.slane %v4054_v48, 2  ;;  %v2946_v55 = vor.u32 %v3251_v43, %v2945_v33  ;;  %v4432_v60 = vpack.c.bf16 %v1425_v40, %v1422_v37  ;;  %vm4447_vm5 = vmpackc.low %vm1465_vm3, %vm1464_vm2  ;;  %v4453_v58 = vpack.c.bf16 %v1438_v47, %v1435_v46  ;;  %v2795_v33 = vld [vmem:[%s4785_s2 + $0x8] sm:$0xf0] }
 0x1b6   : >> { %1952 = vmatpush.bf16.msrb.mxu1 %v2974_v61  ;;  %v2822_v54 = vor.u32 %v3218_v24, %v2819_v57  ;;  %v4434_v61 = vpack.c.bf16 %v1437_v42, %v1434_v56  ;;  %v3230_v37 = vld [vmem:[%s4785_s2 + $0x94] sm:$0xf]  ;;  %v2930_v24 = vor.u32 %v3247_v25, %v2929_v23  ;;  %v3212_v57 = vld [vmem:[%s4785_s2 + $0x4] sm:$0xf]  ;;  %v2921_v40 = vld [vmem:[%s4785_s2 + $0x100] sm:$0xf] }
 0x1b7   : >> { %v1363_v10 = vmul.f32 %v4409_v36, %v1332_v5  ;;  %v1366_v31 = vmul.f32 %v4409_v36, %v1335_v12  ;;  %v3245_v56 = vld [vmem:[%s4785_s2 + $0x104] sm:$0xf0]  ;;  %v2870_v44 = vor.u32 %v3230_v37, %v2867_v38  ;;  %v3228_v46 = vld [vmem:[%s4785_s2 + $0x84] sm:$0xf]  ;;  %v2798_v47 = vor.u32 %v3212_v57, %v2795_v33  ;;  %v2923_v53 = vld [vmem:[%s4785_s2 + $0x108] sm:$0xf0] }
 0x1b8   : >> { %1866 = vmatpush.bf16.msrb.mxu2 %v2962_v3  ;;  %v3244_v52 = vld [vmem:[%s4785_s2 + $0x104] sm:$0xf]  ;;  %v1341_v0 = vld [vmem:[%s4151_s12 + $0x58] sm:$0xff]  ;;  %v2090_v51 = vld [vmem:[%s4789_s6] sm:$0x3] (%p1320_p6) }
 0x1b9   : >> { %1895 = vmatpush.bf16.msrb.mxu3 %v2838_v62  ;;  %1924 = vmatpush.bf16.msrb.mxu0 %v2902_v49  ;;  %v2811_v62 = vld [vmem:[%s4785_s2 + $0x28] sm:$0xf0]  ;;  %v2950_v49 = vor.u32 %v3250_v2, %v2947_v41  ;;  %v1394_v42 = vadd.f32 %v4464_v15, %v1363_v10  ;;  %v1397_v43 = vadd.f32 %v4464_v15, %v1366_v31  ;;  %v1350_v23 = vld [vmem:[%s4151_s12 + $0xa0] sm:$0xff]  ;;  %v1353_v25 = vld [vmem:[%s4151_s12 + $0xb8] sm:$0xff] }
 0x1ba   : >> { %1953 = vmatpush.bf16.msrb.mxu1 %v2966_v34  ;;  %v2814_v9 = vor.u32 %v3216_v28, %v2811_v62  ;;  %v2878_v34 = vor.u32 %v3232_v26, %v2875_v7  ;;  %v2926_v41 = vor.u32 %v3244_v52, %v2923_v53  ;;  %v1338_v62 = vld [vmem:[%s4151_s12 + $0x40] sm:$0xff]  ;;  %v1372_v5 = vmul.f32 %v4409_v36, %v1341_v0 }
 0x1bb   : >> { %v1369_v1 = vmul.f32 %v4409_v36, %v1338_v62  ;;  %v1384_v10 = vmul.f32 %v4409_v36, %v1353_v25 }
 0x1bc   : >> { %1867 = vmatpush.bf16.msrb.mxu2 %v2954_v30  ;;  %v2931_v30 = vld [vmem:[%s4785_s2 + $0x118] sm:$0xf0] }
 0x1bd   : >> { %1896 = vmatpush.bf16.msrb.mxu3 %v2830_v50  ;;  %1925 = vmatpush.bf16.msrb.mxu0 %v2894_v14  ;;  %v3246_v50 = vld [vmem:[%s4785_s2 + $0x114] sm:$0xf]  ;;  %v2922_v14 = vor.u32 %v3245_v56, %v2921_v40  ;;  %v1400_v12 = vadd.f32 %v4464_v15, %v1369_v1 }
 0x1be   : >> { %1954 = vmatpush.bf16.msrb.mxu1 %v2958_v8  ;;  %v2934_v45 = vor.u32 %v3246_v50, %v2931_v30  ;;  %v2859_v8 = vld [vmem:[%s4785_s2 + $0x88] sm:$0xf0] }
 0x1bf   : >> { %2988 = vmatmul.msk.bf16.gmra.mxu0 %vm4413_vm0, %v4432_v60  ;;  %2994 = vmatmul.msk.bf16.gmra.mxu2 %vm4447_vm5, %v4434_v61  ;;  %v2862_v2 = vor.u32 %v3228_v46, %v2859_v8 }
 0x1c0   : >> { %1868 = vmatpush.bf16.msrb.mxu2 %v2946_v55  ;;  %3000 = vmatmul.msk.bf16.gmra.mxu1 %vm4413_vm0, %v4451_v4  ;;  %v1421_v55 = vmax.f32 %v1397_v43, 0.0 }
 0x1c1   : >> { %1897 = vmatpush.bf16.msrb.mxu3 %v2822_v54  ;;  %1926 = vmatpush.bf16.msrb.mxu0 %v2886_v39  ;;  %v1418_v54 = vmax.f32 %v1394_v42, 0.0  ;;  %v1403_v39 = vadd.f32 %v4464_v15, %v1372_v5 }
 0x1c2   : >> { %3006 = vmatmul.msk.bf16.gmra.mxu3 %vm4447_vm5, %v4453_v58  ;;  %1955 = vmatpush.bf16.msrb.mxu1 %v2950_v49  ;;  %v1424_v49 = vmax.f32 %v1400_v12, 0.0 }
 0x1c3   : >> { %v3008_v28 = vpack.c.bf16 %v1421_v55, %v1418_v54  ;;  %v1427_v26 = vmax.f32 %v1403_v39, 0.0 }
 0x1c4   : >> { %1869 = vmatpush.bf16.msrb.mxu2 %v2938_v20  ;;  %v1347_v20 = vld [vmem:[%s4151_s12 + $0x88] sm:$0xff] }
 0x1c5   : >> { %1898 = vmatpush.bf16.msrb.mxu3 %v2814_v9  ;;  %1927 = vmatpush.bf16.msrb.mxu0 %v2878_v34  ;;  %v3011_v7 = vpack.c.bf16 %v1427_v26, %v1424_v49  ;;  %v1344_v9 = vld [vmem:[%s4151_s12 + $0x70] sm:$0xff]  ;;  %s3260_s12 = sshll.u32 %s4122_s18, 4 }
 0x1c6   : >> { %1956 = vmatpush.bf16.msrb.mxu1 %v2942_v35  ;;  %s4605_s11 = scalar_lea.vmem [#allocation3], %s3260_s12 }
 0x1c8   : >> { %1870 = vmatpush.bf16.msrb.mxu2 %v2930_v24 }
 0x1c9   : >> { %1899 = vmatpush.bf16.msrb.mxu3 %v2806_v59  ;;  %1928 = vmatpush.bf16.msrb.mxu0 %v2870_v44 }
 0x1ca   : >> { %1957 = vmatpush.bf16.msrb.mxu1 %v2934_v45 }
 0x1cc   : >> { %1871 = vmatpush.bf16.msrb.mxu2 %v2922_v14 }
 0x1cd   : >> { %1900 = vmatpush.bf16.msrb.mxu3 %v2798_v47  ;;  %1929 = vmatpush.bf16.msrb.mxu0 %v2862_v2 }
 0x1ce   : >> { %1958 = vmatpush.bf16.msrb.mxu1 %v2926_v41 }
 0x1cf   : >> { %3009 = vmatmul.msk.bf16.vlgmr.msrb.gmra.mxu2 %vm4232_vm12, %v3008_v28 }
 0x1d0   : >> { %3033 = vmatmul.msk.bf16.vlgmr.msrb.gmra.mxu0 %vm4232_vm12, %v4287_v29  ;;  %v1378_v29 = vmul.f32 %v4409_v36, %v1347_v20 }
 0x1d1   : >> { %3045 = vmatmul.msk.bf16.vlgmr.msrb.gmra.mxu1 %vm4232_vm12, %v3008_v28 }
 0x1d2   : >> { %3021 = vmatmul.msk.bf16.vlgmr.msrb.gmra.mxu3 %vm4232_vm12, %v4272_v22  ;;  %v1375_v22 = vmul.f32 %v4409_v36, %v1344_v9  ;;  %v1409_v11 = vadd.f32 %v4464_v15, %v1378_v29 }
 0x1d4   : >> { %v1406_v16 = vadd.f32 %v4464_v15, %v1375_v22  ;;  %v1433_v17 = vmax.f32 %v1409_v11, 0.0 }
 0x1d6   : >> { %v1430_v13 = vmax.f32 %v1406_v16, 0.0 }
 0x1d8   : >> { %v3014_v21 = vpack.c.bf16 %v1433_v17, %v1430_v13 }
 0x1df   : >> { %3012 = vmatmul.msk.bf16.gmra.mxu2 %vm4413_vm0, %v3011_v7 }
 0x1e0   : >> { %3036 = vmatmul.msk.bf16.gmra.mxu0 %vm4413_vm0, %v4451_v4  ;;  %v1415_v4 = vadd.f32 %v4464_v15, %v1384_v10 }
 0x1e1   : >> { %3048 = vmatmul.msk.bf16.gmra.mxu1 %vm4413_vm0, %v3011_v7 }
 0x1e2   : >> { %3024 = vmatmul.msk.bf16.gmra.mxu3 %vm4413_vm0, %v4432_v60  ;;  %v1381_v60 = vmul.f32 %v4409_v36, %v1350_v23  ;;  %v1439_v34 = vmax.f32 %v1415_v4, 0.0 }
 0x1e4   : >> { %v1412_v19 = vadd.f32 %v4464_v15, %v1381_v60 }
 0x1e6   : >> { %v1436_v31 = vmax.f32 %v1412_v19, 0.0 }
 0x1e8   : >> { %v3017_v35 = vpack.c.bf16 %v1439_v34, %v1436_v31 }
 0x1ef   : >> { %3015 = vmatmul.msk.bf16.gmra.mxu2 %vm4248_vm13, %v3014_v21 }
 0x1f0   : >> { %3039 = vmatmul.msk.bf16.gmra.mxu0 %vm4248_vm13, %v4289_v32 }
 0x1f1   : >> { %3051 = vmatmul.msk.bf16.gmra.mxu1 %vm4248_vm13, %v3014_v21 }
 0x1f2   : >> { %3027 = vmatmul.msk.bf16.gmra.mxu3 %vm4248_vm13, %v4274_v18 }
 0x1ff   : >> { %3018 = vmatmul.msk.bf16.gmra.mxu2 %vm4447_vm5, %v3017_v35 }
 0x200   : >> { %3042 = vmatmul.msk.bf16.gmra.mxu0 %vm4447_vm5, %v4453_v58 }
 0x201   : >> { %3054 = vmatmul.msk.bf16.gmra.mxu1 %vm4447_vm5, %v3017_v35 }
 0x202   : >> { %3030 = vmatmul.msk.bf16.gmra.mxu3 %vm4447_vm5, %v4434_v61 }
 0x22c   : >> { %v1815_v63 = vpop.f32.mrf.mxu0 }
 0x22d   : >> { %v1844_v18 = vpop.f32.mrf.mxu1 }
 0x22e   : >> { %v1845_v42 = vadd.f32 %v1844_v18, %v1815_v63 }
 0x232   : >> { %v1825_v32 = vpop.f32.mrf.mxu2 }
 0x234   : >> { %v1817_v15 = vpop.f32.mrf.mxu0 }
 0x235   : >> { %v1854_v36 = vpop.f32.mrf.mxu3  ;;  %v1846_v37 = vpop.f32.mrf.mxu1 }
 0x236   : >> { %v1847_v52 = vadd.f32 %v1846_v37, %v1817_v15  ;;  %v1855_v21 = vadd.f32 %v1854_v36, %v1825_v32 }
 0x23a   : >> { %v4594_v38 = vpop.f32.mrf.mxu2 }
 0x23c   : >> { %v1820_v24 = vpop.f32.mrf.mxu0 }
 0x23d   : >> { %v1856_v59 = vpop.f32.mrf.mxu3  ;;  %v1849_v50 = vpop.f32.mrf.mxu1 }
 0x23e   : >> { %v1850_v0 = vadd.f32 %v1849_v50, %v1820_v24  ;;  %v1857_v31 = vadd.f32 %v1856_v59, %v4594_v38 }
 0x242   : >> { %v4596_v61 = vpop.f32.mrf.mxu2 }
 0x244   : >> { %v1822_v58 = vpop.f32.mrf.mxu0 }
 0x245   : >> { %v4598_v30 = vpop.f32.mrf.mxu3  ;;  %v1851_v57 = vpop.f32.mrf.mxu1 }
 0x246   : >> { %v1852_v9 = vadd.f32 %v1851_v57, %v1822_v58  ;;  %v1860_v32 = vadd.f32 %v4598_v30, %v4596_v61 }
 0x24a   : >> { %v4600_v3 = vpop.f32.mrf.mxu2 }
 0x24d   : >> { %v4602_v33 = vpop.f32.mrf.mxu3  ;;  %v1931_v40 = vpop.f32.mrf.mxu0 }
 0x24e   : >> { %v1960_v56 = vpop.f32.mrf.mxu1 }
 0x252   : >> { %v1873_v43 = vpop.f32.mrf.mxu2 }
 0x253   : >> { %v1874_v44 = vadd.f32 %v1873_v43, %v1845_v42 }
 0x255   : >> { %v1902_v45 = vpop.f32.mrf.mxu3  ;;  %1983 = vst [vmem:[%s4605_s11] sm:$0xff] %v1874_v44  ;;  %v1933_v47 = vpop.f32.mrf.mxu0  ;;  %v2034_v36 = vmul.f32 %v1874_v44, %v1874_v44 }
 0x256   : >> { %v1932_v46 = vadd.f32 %v1931_v40, %v1902_v45  ;;  %v1962_v8 = vpop.f32.mrf.mxu1 }
 0x258   : >> { %v4608_v14 = vadd.f32 %v1960_v56, %v1932_v46 }
 0x25a   : >> { %1984 = vst [vmem:[%s4605_s11 + $0x8] sm:$0xff] %v4608_v14  ;;  %v1875_v53 = vpop.f32.mrf.mxu2 }
 0x25b   : >> { %v1876_v54 = vadd.f32 %v1875_v53, %v1847_v52 }
 0x25d   : >> { %v1904_v55 = vpop.f32.mrf.mxu3  ;;  %1985 = vst [vmem:[%s4605_s11 + $0x10] sm:$0xff] %v1876_v54  ;;  %v1936_v41 = vpop.f32.mrf.mxu0  ;;  %v2036_v24 = vmul.f32 %v1876_v54, %v1876_v54  ;;  %v2000_v50 = vadd.f32 %v1876_v54, %v1874_v44 }
 0x25e   : >> { %v1934_v2 = vadd.f32 %v1933_v47, %v1904_v55  ;;  %v1965_v62 = vpop.f32.mrf.mxu1  ;;  %v2035_v47 = vmul.f32 %v4608_v14, %v4608_v14 }
 0x25f   : >> { %v2050_v38 = vadd.f32 %v2036_v24, %v2034_v36 }
 0x260   : >> { %v1963_v28 = vadd.f32 %v1962_v8, %v1934_v2 }
 0x262   : >> { %1986 = vst [vmem:[%s4605_s11 + $0x18] sm:$0xff] %v1963_v28  ;;  %v1878_v1 = vpop.f32.mrf.mxu2  ;;  %v2037_v40 = vmul.f32 %v1963_v28, %v1963_v28  ;;  %v2013_v8 = vadd.f32 %v1963_v28, %v4608_v14  ;;  %v1862_v14 = vadd.f32 %v4602_v33, %v4600_v3 }
 0x263   : >> { %v1879_v5 = vadd.f32 %v1878_v1, %v1850_v0 }
 0x264   : >> { %v2063_v54 = vadd.f32 %v2037_v40, %v2035_v47 }
 0x265   : >> { %v1907_v12 = vpop.f32.mrf.mxu3  ;;  %1987 = vst [vmem:[%s4605_s11 + $0x20] sm:$0xff] %v1879_v5  ;;  %v1938_v49 = vpop.f32.mrf.mxu0  ;;  %v2038_v58 = vmul.f32 %v1879_v5, %v1879_v5  ;;  %v2001_v59 = vadd.f32 %v2000_v50, %v1879_v5 }
 0x266   : >> { %v1937_v39 = vadd.f32 %v1936_v41, %v1907_v12  ;;  %v1967_v7 = vpop.f32.mrf.mxu1 }
 0x267   : >> { %v2051_v30 = vadd.f32 %v2050_v38, %v2038_v58 }
 0x268   : >> { %v1966_v26 = vadd.f32 %v1965_v62, %v1937_v39 }
 0x26a   : >> { %1988 = vst [vmem:[%s4605_s11 + $0x28] sm:$0xff] %v1966_v26  ;;  %v1880_v20 = vpop.f32.mrf.mxu2  ;;  %v2039_v52 = vmul.f32 %v1966_v26, %v1966_v26  ;;  %v2014_v55 = vadd.f32 %v2013_v8, %v1966_v26 }
 0x26b   : >> { %v1881_v22 = vadd.f32 %v1880_v20, %v1852_v9 }
 0x26c   : >> { %v2064_v5 = vadd.f32 %v2063_v54, %v2039_v52 }
 0x26d   : >> { %v1909_v29 = vpop.f32.mrf.mxu3  ;;  %1989 = vst [vmem:[%s4605_s11 + $0x30] sm:$0xff] %v1881_v22  ;;  %v1941_v11 = vpop.f32.mrf.mxu0  ;;  %v2040_v42 = vmul.f32 %v1881_v22, %v1881_v22  ;;  %v2002_v44 = vadd.f32 %v2001_v59, %v1881_v22 }
 0x26e   : >> { %v1939_v16 = vadd.f32 %v1938_v49, %v1909_v29  ;;  %v1970_v17 = vpop.f32.mrf.mxu1 }
 0x26f   : >> { %v2052_v62 = vadd.f32 %v2051_v30, %v2040_v42 }
 0x270   : >> { %v1968_v13 = vadd.f32 %v1967_v7, %v1939_v16 }
 0x272   : >> { %1990 = vst [vmem:[%s4605_s11 + $0x38] sm:$0xff] %v1968_v13  ;;  %v1883_v23 = vpop.f32.mrf.mxu2  ;;  %v2041_v2 = vmul.f32 %v1968_v13, %v1968_v13  ;;  %v2015_v12 = vadd.f32 %v2014_v55, %v1968_v13  ;;  %v1999_v55 = vld [vmem:[#allocation6] sm:$0x3] }
 0x273   : >> { %v1884_v25 = vadd.f32 %v1883_v23, %v1855_v21 }
 0x274   : >> { %v2065_v9 = vadd.f32 %v2064_v5, %v2041_v2 }
 0x275   : >> { %v1912_v60 = vpop.f32.mrf.mxu3  ;;  %1991 = vst [vmem:[%s4605_s11 + $0x40] sm:$0xff] %v1884_v25  ;;  %v1943_v4 = vpop.f32.mrf.mxu0  ;;  %v2042_v53 = vmul.f32 %v1884_v25, %v1884_v25  ;;  %v2003_v0 = vadd.f32 %v2002_v44, %v1884_v25 }
 0x276   : >> { %v1942_v10 = vadd.f32 %v1941_v11, %v1912_v60  ;;  %v1972_v34 = vpop.f32.mrf.mxu1 }
 0x277   : >> { %v2053_v28 = vadd.f32 %v2052_v62, %v2042_v53 }
 0x278   : >> { %v1971_v19 = vadd.f32 %v1970_v17, %v1942_v10 }
 0x27a   : >> { %1992 = vst [vmem:[%s4605_s11 + $0x48] sm:$0xff] %v1971_v19  ;;  %v1885_v35 = vpop.f32.mrf.mxu2  ;;  %v2043_v39 = vmul.f32 %v1971_v19, %v1971_v19  ;;  %v2016_v20 = vadd.f32 %v2015_v12, %v1971_v19 }
 0x27b   : >> { %v1886_v63 = vadd.f32 %v1885_v35, %v1857_v31 }
 0x27c   : >> { %v2066_v13 = vadd.f32 %v2065_v9, %v2043_v39 }
 0x27d   : >> { %v1914_v18 = vpop.f32.mrf.mxu3  ;;  %1993 = vst [vmem:[%s4605_s11 + $0x50] sm:$0xff] %v1886_v63  ;;  %v1946_v57 = vpop.f32.mrf.mxu0  ;;  %v2044_v1 = vmul.f32 %v1886_v63, %v1886_v63  ;;  %v2004_v49 = vadd.f32 %v2003_v0, %v1886_v63 }
 0x27e   : >> { %v1944_v15 = vadd.f32 %v1943_v4, %v1914_v18  ;;  %v1975_v43 = vpop.f32.mrf.mxu1 }
 0x27f   : >> { %v2054_v29 = vadd.f32 %v2053_v28, %v2044_v1  ;;  %v2033_v1 = vld [vmem:[#allocation7] sm:$0x3] }
 0x280   : >> { %v1973_v37 = vadd.f32 %v1972_v34, %v1944_v15 }
 0x282   : >> { %1994 = vst [vmem:[%s4605_s11 + $0x58] sm:$0xff] %v1973_v37  ;;  %v1888_v56 = vpop.f32.mrf.mxu2  ;;  %v2045_v22 = vmul.f32 %v1973_v37, %v1973_v37  ;;  %v2017_v23 = vadd.f32 %v2016_v20, %v1973_v37 }
 0x283   : >> { %v1889_v45 = vadd.f32 %v1888_v56, %v1860_v32 }
 0x284   : >> { %v2067_v31 = vadd.f32 %v2066_v13, %v2045_v22 }
 0x285   : >> { %v1917_v46 = vpop.f32.mrf.mxu3  ;;  %1995 = vst [vmem:[%s4605_s11 + $0x60] sm:$0xff] %v1889_v45  ;;  %v2046_v7 = vmul.f32 %v1889_v45, %v1889_v45  ;;  %v2005_v16 = vadd.f32 %v2004_v49, %v1889_v45  ;;  %v1948_v11 = vpop.f32.mrf.mxu0 }
 0x286   : >> { %v1947_v61 = vadd.f32 %v1946_v57, %v1917_v46  ;;  %v1977_v3 = vpop.f32.mrf.mxu1 }
 0x287   : >> { %v2055_v10 = vadd.f32 %v2054_v29, %v2046_v7 }
 0x288   : >> { %v1976_v41 = vadd.f32 %v1975_v43, %v1947_v61 }
 0x28a   : >> { %1996 = vst [vmem:[%s4605_s11 + $0x68] sm:$0xff] %v1976_v41  ;;  %v1890_v26 = vpop.f32.mrf.mxu2  ;;  %v2047_v25 = vmul.f32 %v1976_v41, %v1976_v41  ;;  %v2018_v34 = vadd.f32 %v2017_v23, %v1976_v41  ;;  %v2103_v23 = vld [vmem:[%s4790_s7] sm:$0x3] (%p1320_p6) }
 0x28b   : >> { %v1891_v17 = vadd.f32 %v1890_v26, %v1862_v14 }
 0x28c   : >> { %v2068_v18 = vadd.f32 %v2067_v31, %v2047_v25 }
 0x28d   : >> { %v1919_v21 = vpop.f32.mrf.mxu3  ;;  %1997 = vst [vmem:[%s4605_s11 + $0x70] sm:$0xff] %v1891_v17  ;;  %v2006_v33 = vadd.f32 %v2005_v16, %v1891_v17  ;;  %v2048_v4 = vmul.f32 %v1891_v17, %v1891_v17 }
 0x28e   : >> { %v1949_v60 = vadd.f32 %v1948_v11, %v1919_v21 }
 0x28f   : >> { %v2007_v35 = vrot.slane %v2006_v33, 4  ;;  %v2056_v63 = vadd.f32 %v2055_v10, %v2048_v4 }
 0x290   : >> { %v1978_v19 = vadd.f32 %v1977_v3, %v1949_v60 }
 0x291   : >> { %v2008_v32 = vadd.f32 %v2007_v35, %v2006_v33  ;;  %v2057_v36 = vrot.slane %v2056_v63, 4 }
 0x292   : >> { %1998 = vst [vmem:[%s4605_s11 + $0x78] sm:$0xff] %v1978_v19  ;;  %v2019_v15 = vadd.f32 %v2018_v34, %v1978_v19  ;;  %v2049_v24 = vmul.f32 %v1978_v19, %v1978_v19 }
 0x293   : >> { %v2009_v58 = vrot.slane %v2008_v32, 2  ;;  %v2058_v57 = vadd.f32 %v2057_v36, %v2056_v63 }
 0x294   : >> { %v2020_v50 = vrot.slane %v2019_v15, 4  ;;  %v2069_v37 = vadd.f32 %v2068_v18, %v2049_v24 }
 0x295   : >> { %v2059_v38 = vrot.slane %v2058_v57, 2  ;;  %v2010_v59 = vadd.f32 %v2009_v58, %v2008_v32 }
 0x296   : >> { %v2021_v40 = vadd.f32 %v2020_v50, %v2019_v15  ;;  %v2070_v56 = vrot.slane %v2069_v37, 4 }
 0x297   : >> { %v2060_v45 = vadd.f32 %v2059_v38, %v2058_v57  ;;  %v2011_v8 = vrot.slane %v2010_v59, 1 }
 0x298   : >> { %v2022_v42 = vrot.slane %v2021_v40, 2  ;;  %v2071_v43 = vadd.f32 %v2070_v56, %v2069_v37 }
 0x299   : >> { %v2061_v30 = vrot.slane %v2060_v45, 1  ;;  %v2012_v54 = vadd.f32 %v2011_v8, %v2010_v59 }
 0x29a   : >> { %v2023_v46 = vadd.f32 %v2022_v42, %v2021_v40  ;;  %v2072_v47 = vrot.slane %v2071_v43, 2 }
 0x29b   : >> { %v2062_v62 = vadd.f32 %v2061_v30, %v2060_v45 }
 0x29c   : >> { %v2024_v52 = vrot.slane %v2023_v46, 1  ;;  %v2073_v61 = vadd.f32 %v2072_v47, %v2071_v43 }
 0x29e   : >> { %v2025_v44 = vadd.f32 %v2024_v52, %v2023_v46  ;;  %v2074_v53 = vrot.slane %v2073_v61, 1 }
 0x2a0   : >> { %v2028_v2 = vrot.slane %v2025_v44, 7  ;;  %v2075_v41 = vadd.f32 %v2074_v53, %v2073_v61 }
 0x2a2   : >> { %v2029_v0 = vsel %vm1202_vm1, %v2012_v54, %v2028_v2  ;;  %v2078_v5 = vrot.slane %v2075_v41, 7 }
 0x2a3   : >> { %v2031_v12 = vadd.f32 %v2029_v0, %v1999_v55  ;;  %1322 = sbr.rel (!%p1320_p6) target bundleno = 397 (0x18d), region = 105 }
 0x2a4   : >> { %v2079_v39 = vsel %vm1202_vm1, %v2062_v62, %v2078_v5 }
 0x2a5   : >> { %2032 = vst.msk [vmem:[#allocation6] sm:$0x3] %vm4043_vm4, %v2031_v12  ;;  %v2081_v14 = vadd.f32 %v2079_v39, %v2033_v1 }
 0x2a7   : >> { %2082 = vst.msk [vmem:[#allocation7] sm:$0x3] %vm4043_vm4, %v2081_v14 }
 0x2ac   : > { %v2083_v28 = vld [vmem:[#allocation6] sm:$0x3] }
 0x2ad   : > { %v2084_v7 = vmul.f32 0.005, %v2083_v28 }
 0x2ae   : > { %v2085_v49 = vld [vmem:[#allocation7] sm:$0x3] }
 0x2af   : > { %v2086_v9 = vmul.f32 0.005, %v2085_v49  ;;  %v2087_v20 = vmul.f32 %v2084_v7, %v2084_v7 }
 0x2b1   : > { %v2088_v22 = vsub.f32 %v2086_v9, %v2087_v20 }
 0x2b3   : > { %v2089_v26 = vmax.f32 %v2088_v22, 0.0 }
 0x2b5   : > { %v2091_v29 = vadd.f32 1e-05, %v2089_v26 }
 0x2b7   : > { %3355 = vrsqrt.f32 %v2091_v29  ;;  %vm2098_vm6 = vweird.f32 %v2091_v29 }
 0x2bd   : > { %v3356_v16 = vpop.eup %3355 }
 0x2be   : > { %v2093_v11 = vmul.f32 %v3356_v16, %v2091_v29  ;;  %vm2099_vm7 = vweird.f32 %v3356_v16 }
 0x2bf   : > { %vm2100_vm8 = vmor %vm2098_vm6, %vm2099_vm7 }
 0x2c0   : > { %v2094_v17 = vmul.f32 %v3356_v16, %v2093_v11 }
 0x2c2   : > { %v2095_v21 = vmul.f32 0.5, %v2094_v17 }
 0x2c4   : > { %v2096_v13 = vsub.f32 1.5, %v2095_v21 }
 0x2c6   : > { %v2097_v6 = vmul.f32 %v3356_v16, %v2096_v13 }
 0x2c8   : > { %v2101_v48 = vsel %vm2100_vm8, %v3356_v16, %v2097_v6 }
 0x2c9   : > { %v4646_v27 = vmul.f32 %v2101_v48, %v2090_v51 }
 0x2cb   : > { %v2104_v25 = vmul.f32 %v4646_v27, %v2084_v7 }
 0x2cd   : > { %v4652_v60 = vsub.f32 %v2103_v23, %v2104_v25 }
 0x2ce LB: >> { %v3269_v10 = vld [vmem:[%s4786_s3 + $0x38] sm:$0xff]  ;;  %v3268_v33 = vld [vmem:[%s4786_s3 + $0x30] sm:$0xff]  ;;  %s3057_s25 = sshll.u32 %s3379_s17, 6  ;;  %v3267_v31 = vld [vmem:[%s4786_s3 + $0x28] sm:$0xff]  ;;  %v4690_v18 = vperm.slane %v4646_v27, 0  ;;  %v4700_v36 = vperm.slane %v4646_v27, 1  ;;  %s3379_s17 = sphi %s4654_s17, %s2111_s17  }
 0x2cf   : >> { %v3277_v3 = vld [vmem:[%s4786_s3 + $0x78] sm:$0xff]  ;;  %2328 = vmatpush.bf16.msra.mxu0 %v3269_v10  ;;  %3310 = vmatpush.bf16.msra.mxu2 %v3269_v10  ;;  %v3276_v4 = vld [vmem:[%s4786_s3 + $0x70] sm:$0xff]  ;;  %s2113_s30 = sshra.s32 %s3057_s25, 3  ;;  %v3275_v34 = vld [vmem:[%s4786_s3 + $0x68] sm:$0xff]  ;;  %v4710_v59 = vperm.slane %v4652_v60, 0  ;;  %v4713_v42 = vperm.slane %v4652_v60, 1  ;;  %s2386_s16 = scalar_lea.vmem %s4791_s8, %s3057_s25 }
 0x2d0   : >> { %2357 = vmatpush.bf16.msra.mxu1 %v3277_v3  ;;  %3318 = vmatpush.bf16.msra.mxu3 %v3277_v3  ;;  %s3261_s12 = sshll.u32 %s2113_s30, 4  ;;  %v3266_v19 = vld [vmem:[%s4786_s3 + $0x20] sm:$0xff]  ;;  %v3265_v63 = vld [vmem:[%s4786_s3 + $0x18] sm:$0xff]  ;;  %v3264_v8 = vld [vmem:[%s4786_s3 + $0x10] sm:$0xff]  ;;  %s2111_s17 = sadd.s32 1, %s3379_s17  }
 0x2d1   : >> { %v3274_v35 = vld [vmem:[%s4786_s3 + $0x60] sm:$0xff]  ;;  %v3273_v15 = vld [vmem:[%s4786_s3 + $0x58] sm:$0xff]  ;;  %s4695_s22 = scalar_lea.vmem [#allocation3], %s3261_s12  ;;  %v3272_v44 = vld [vmem:[%s4786_s3 + $0x50] sm:$0xff]  ;;  %p2108_p7 = scmp.ge.s32.totalorder %s2111_s17, 4  }
 0x2d2   : >> { %v2118_v24 = vld [vmem:[%s4695_s22] sm:$0xff]  ;;  %v2120_v32 = vld [vmem:[%s4695_s22 + $0x10] sm:$0xff]  ;;  %v2119_v58 = vld [vmem:[%s4695_s22 + $0x8] sm:$0xff] }
 0x2d3   : >> { %2329 = vmatpush.bf16.msra.mxu0 %v3268_v33  ;;  %3311 = vmatpush.bf16.msra.mxu2 %v3268_v33  ;;  %v2126_v50 = vld [vmem:[%s4695_s22 + $0x40] sm:$0xff]  ;;  %v2128_v37 = vld [vmem:[%s4695_s22 + $0x50] sm:$0xff]  ;;  %v2121_v57 = vld [vmem:[%s4695_s22 + $0x18] sm:$0xff]  ;;  %v2139_v38 = vmul.f32 %v4690_v18, %v2118_v24  ;;  %v2141_v43 = vmul.f32 %v4690_v18, %v2120_v32  ;;  %v2140_v47 = vmul.f32 %v4700_v36, %v2119_v58 }
 0x2d4   : >> { %2358 = vmatpush.bf16.msra.mxu1 %v3276_v4  ;;  %3319 = vmatpush.bf16.msra.mxu3 %v3276_v4  ;;  %v2127_v40 = vld [vmem:[%s4695_s22 + $0x48] sm:$0xff]  ;;  %v2129_v56 = vld [vmem:[%s4695_s22 + $0x58] sm:$0xff]  ;;  %v2147_v45 = vmul.f32 %v4690_v18, %v2126_v50  ;;  %v2149_v46 = vmul.f32 %v4690_v18, %v2128_v37  ;;  %v2142_v52 = vmul.f32 %v4700_v36, %v2121_v57  ;;  %v3262_v7 = vld [vmem:[%s4786_s3] sm:$0xff] }
 0x2d5   : >> { %v2148_v61 = vmul.f32 %v4700_v36, %v2127_v40  ;;  %v2150_v30 = vmul.f32 %v4700_v36, %v2129_v56  ;;  %v2160_v53 = vadd.f32 %v4710_v59, %v2139_v38  ;;  %v2162_v54 = vadd.f32 %v4710_v59, %v2141_v43  ;;  %v3263_v62 = vld [vmem:[%s4786_s3 + $0x8] sm:$0xff]  ;;  %v3270_v29 = vld [vmem:[%s4786_s3 + $0x40] sm:$0xff]  ;;  %v2124_v21 = vld [vmem:[%s4695_s22 + $0x30] sm:$0xff] }
 0x2d6   : >> { %v2168_v55 = vadd.f32 %v4710_v59, %v2147_v45  ;;  %v2170_v2 = vadd.f32 %v4710_v59, %v2149_v46  ;;  %v2161_v41 = vadd.f32 %v4713_v42, %v2140_v47  ;;  %v2163_v0 = vadd.f32 %v4713_v42, %v2142_v52  ;;  %v3271_v12 = vld [vmem:[%s4786_s3 + $0x48] sm:$0xff]  ;;  %v2122_v17 = vld [vmem:[%s4695_s22 + $0x20] sm:$0xff]  ;;  %v2132_v48 = vld [vmem:[%s4695_s22 + $0x70] sm:$0xff] }
 0x2d7   : >> { %2330 = vmatpush.bf16.msra.mxu0 %v3267_v31  ;;  %3312 = vmatpush.bf16.msra.mxu2 %v3267_v31  ;;  %v2169_v1 = vadd.f32 %v4713_v42, %v2148_v61  ;;  %v2171_v5 = vadd.f32 %v4713_v42, %v2150_v30  ;;  %v2176_v39 = vmax.f32 %v2160_v53, 0.0  ;;  %v2178_v14 = vmax.f32 %v2162_v54, 0.0  ;;  %v2130_v6 = vld [vmem:[%s4695_s22 + $0x60] sm:$0xff]  ;;  %v2123_v23 = vld [vmem:[%s4695_s22 + $0x28] sm:$0xff]  ;;  %v2125_v25 = vld [vmem:[%s4695_s22 + $0x38] sm:$0xff] }
 0x2d8   : >> { %2359 = vmatpush.bf16.msra.mxu1 %v3275_v34  ;;  %3320 = vmatpush.bf16.msra.mxu3 %v3275_v34  ;;  %v2184_v28 = vmax.f32 %v2168_v55, 0.0  ;;  %v2186_v49 = vmax.f32 %v2170_v2, 0.0  ;;  %v2177_v9 = vmax.f32 %v2161_v41, 0.0  ;;  %v2179_v20 = vmax.f32 %v2163_v0, 0.0  ;;  %v2131_v10 = vld [vmem:[%s4695_s22 + $0x68] sm:$0xff]  ;;  %v2133_v3 = vld [vmem:[%s4695_s22 + $0x78] sm:$0xff] }
 0x2d9   : >> { %v2185_v22 = vmax.f32 %v2169_v1, 0.0  ;;  %v2187_v26 = vmax.f32 %v2171_v5, 0.0  ;;  %v2192_v16 = vpack.c.bf16 %v2178_v14, %v2176_v39  ;;  %v2143_v33 = vmul.f32 %v4690_v18, %v2122_v17 }
 0x2da   : >> { %v2196_v11 = vpack.c.bf16 %v2186_v49, %v2184_v28  ;;  %v2193_v13 = vpack.c.bf16 %v2179_v20, %v2177_v9  ;;  %v2145_v4 = vmul.f32 %v4690_v18, %v2124_v21  ;;  %v2151_v31 = vmul.f32 %v4690_v18, %v2130_v6 }
 0x2db   : >> { %2331 = vmatpush.bf16.msra.mxu0 %v3266_v19  ;;  %3313 = vmatpush.bf16.msra.mxu2 %v3266_v19  ;;  %v2197_v51 = vpack.c.bf16 %v2187_v26, %v2185_v22  ;;  %v2153_v34 = vmul.f32 %v4690_v18, %v2132_v48  ;;  %v2144_v19 = vmul.f32 %v4700_v36, %v2123_v23 }
 0x2dc   : >> { %2360 = vmatpush.bf16.msra.mxu1 %v3274_v35  ;;  %3321 = vmatpush.bf16.msra.mxu3 %v3274_v35  ;;  %v2146_v35 = vmul.f32 %v4700_v36, %v2125_v25  ;;  %v2164_v24 = vadd.f32 %v4710_v59, %v2143_v33  ;;  %v2166_v32 = vadd.f32 %v4710_v59, %v2145_v4 }
 0x2dd   : >> { %v2172_v50 = vadd.f32 %v4710_v59, %v2151_v31  ;;  %v2174_v37 = vadd.f32 %v4710_v59, %v2153_v34  ;;  %v2165_v18 = vadd.f32 %v4713_v42, %v2144_v19 }
 0x2de   : >> { %v2167_v58 = vadd.f32 %v4713_v42, %v2146_v35  ;;  %v2180_v56 = vmax.f32 %v2164_v24, 0.0  ;;  %v2182_v38 = vmax.f32 %v2166_v32, 0.0 }
 0x2df   : >> { %2332 = vmatpush.bf16.msra.mxu0 %v3265_v63  ;;  %3314 = vmatpush.bf16.msra.mxu2 %v3265_v63  ;;  %v2152_v63 = vmul.f32 %v4700_v36, %v2131_v10  ;;  %v2188_v43 = vmax.f32 %v2172_v50, 0.0  ;;  %v2181_v45 = vmax.f32 %v2165_v18, 0.0 }
 0x2e0   : >> { %2361 = vmatpush.bf16.msra.mxu1 %v3273_v15  ;;  %3322 = vmatpush.bf16.msra.mxu3 %v3273_v15  ;;  %v2154_v15 = vmul.f32 %v4700_v36, %v2133_v3  ;;  %v2190_v36 = vmax.f32 %v2174_v37, 0.0  ;;  %v2183_v46 = vmax.f32 %v2167_v58, 0.0  ;;  %v2194_v52 = vpack.c.bf16 %v2182_v38, %v2180_v56 }
 0x2e1   : >> { %v2173_v57 = vadd.f32 %v4713_v42, %v2152_v63 }
 0x2e2   : >> { %v2175_v40 = vadd.f32 %v4713_v42, %v2154_v15  ;;  %v2198_v61 = vpack.c.bf16 %v2190_v36, %v2188_v43  ;;  %v2195_v59 = vpack.c.bf16 %v2183_v46, %v2181_v45 }
 0x2e3   : >> { %2333 = vmatpush.bf16.msra.mxu0 %v3264_v8  ;;  %3315 = vmatpush.bf16.msra.mxu2 %v3264_v8  ;;  %v2189_v47 = vmax.f32 %v2173_v57, 0.0 }
 0x2e4   : >> { %2362 = vmatpush.bf16.msra.mxu1 %v3272_v44  ;;  %3323 = vmatpush.bf16.msra.mxu3 %v3272_v44  ;;  %v2191_v8 = vmax.f32 %v2175_v40, 0.0 }
 0x2e6   : >> { %v2199_v30 = vpack.c.bf16 %v2191_v8, %v2189_v47 }
 0x2e7   : >> { %2334 = vmatpush.bf16.msra.mxu0 %v3263_v62  ;;  %3316 = vmatpush.bf16.msra.mxu2 %v3263_v62 }
 0x2e8   : >> { %2363 = vmatpush.bf16.msra.mxu1 %v3271_v12  ;;  %3324 = vmatpush.bf16.msra.mxu3 %v3271_v12 }
 0x2eb   : >> { %2335 = vmatpush.bf16.msra.mxu0 %v3262_v7  ;;  %3317 = vmatpush.bf16.msra.mxu2 %v3262_v7 }
 0x2ec   : >> { %2364 = vmatpush.bf16.msra.mxu1 %v3270_v29  ;;  %3325 = vmatpush.bf16.msra.mxu3 %v3270_v29 }
 0x2ee   : >> { %2336 = vmatmul.bf16.vlgmr.msra.gmra.mxu0 %v2192_v16  ;;  %2346 = vmatmul.bf16.vlgmr.msra.gmra.mxu2 %v2196_v11 }
 0x2ef   : >> { %2365 = vmatmul.bf16.vlgmr.msra.gmra.mxu1 %v2193_v13  ;;  %2375 = vmatmul.bf16.vlgmr.msra.gmra.mxu3 %v2197_v51 }
 0x2fe   : >> { %2341 = vmatmul.bf16.gmra.mxu0 %v2194_v52  ;;  %2351 = vmatmul.bf16.gmra.mxu2 %v2198_v61 }
 0x2ff   : >> { %2370 = vmatmul.bf16.gmra.mxu1 %v2195_v59  ;;  %2380 = vmatmul.bf16.gmra.mxu3 %v2199_v30 }
 0x36b   : >> { %v2337_v44 = vpop.f32.mrf.mxu0 }
 0x36c   : >> { %v2366_v53 = vpop.f32.mrf.mxu1 }
 0x36d   : >> { %v2367_v42 = vadd.f32 %v2366_v53, %v2337_v44 }
 0x36f   : >> { %2387 = vst [vmem:[%s2386_s16] sm:$0xff] %v2367_v42 }
 0x371   : >> { %v2347_v54 = vpop.f32.mrf.mxu2 }
 0x372   : >> { %v2376_v55 = vpop.f32.mrf.mxu3 }
 0x373   : >> { %v2377_v2 = vadd.f32 %v2376_v55, %v2347_v54  ;;  %v2339_v41 = vpop.f32.mrf.mxu0 }
 0x374   : >> { %v2368_v62 = vpop.f32.mrf.mxu1 }
 0x375   : >> { %2391 = vst [vmem:[%s2386_s16 + $0x20] sm:$0xff] %v2377_v2  ;;  %v2369_v0 = vadd.f32 %v2368_v62, %v2339_v41 }
 0x377   : >> { %2388 = vst [vmem:[%s2386_s16 + $0x8] sm:$0xff] %v2369_v0 }
 0x379   : >> { %v2349_v1 = vpop.f32.mrf.mxu2 }
 0x37a   : >> { %v2378_v5 = vpop.f32.mrf.mxu3 }
 0x37b   : >> { %v2379_v12 = vadd.f32 %v2378_v5, %v2349_v1  ;;  %v2342_v39 = vpop.f32.mrf.mxu0 }
 0x37c   : >> { %v2371_v14 = vpop.f32.mrf.mxu1 }
 0x37d   : >> { %2392 = vst [vmem:[%s2386_s16 + $0x28] sm:$0xff] %v2379_v12  ;;  %v2372_v28 = vadd.f32 %v2371_v14, %v2342_v39 }
 0x37f   : >> { %2389 = vst [vmem:[%s2386_s16 + $0x10] sm:$0xff] %v2372_v28 }
 0x381   : >> { %v2352_v49 = vpop.f32.mrf.mxu2 }
 0x382   : >> { %v2381_v7 = vpop.f32.mrf.mxu3 }
 0x383   : >> { %v2382_v9 = vadd.f32 %v2381_v7, %v2352_v49  ;;  %v2344_v20 = vpop.f32.mrf.mxu0 }
 0x384   : >> { %v2373_v22 = vpop.f32.mrf.mxu1 }
 0x385   : >> { %2393 = vst [vmem:[%s2386_s16 + $0x30] sm:$0xff] %v2382_v9  ;;  %v2374_v26 = vadd.f32 %v2373_v22, %v2344_v20 }
 0x387   : >> { %2390 = vst [vmem:[%s2386_s16 + $0x18] sm:$0xff] %v2374_v26 }
 0x389   : >> { %v2354_v29 = vpop.f32.mrf.mxu2  ;;  %2110 = sbr.rel (!%p2108_p7) target bundleno = 718 (0x2ce), region = 116 }
 0x38a   : >> { %v2383_v16 = vpop.f32.mrf.mxu3 }
 0x38b   : >> { %v2384_v11 = vadd.f32 %v2383_v16, %v2354_v29 }
 0x38d   : >> { %2394 = vst [vmem:[%s2386_s16 + $0x38] sm:$0xff] %v2384_v11 }
 0x38e PF: > { %s18_s27 = sadd.s32 1, %s3371_s27  }
 0x38f   : > { %p15_p8 = scmp.ge.s32.totalorder %s18_s27, 6  }
 0x391   :  { %17 = sbr.rel (!%p15_p8) target bundleno = 1 (0x1), region = 127 }

</bundles_post_ra>
